<compile_context>
chip_gen: v7x
topology: tpu7x:2x2x1
jax: 0.10.0
libtpu: 0.0.40
codegen_flags: <defaults>
</compile_context>

<pallas_src>
import functools

import jax
import jax.numpy as jnp
from jax import lax
from jax.experimental import pallas as pl
from jax.experimental.pallas import tpu as pltpu


def _sigmoid_f32(z):
    # sigmoid(z) == 0.5 * tanh(0.5 * z) + 0.5 : tanh goes to the EUP slot,
    # the scale/shift are cheap VPU ops, and there is no divide on the VALUs.
    return 0.5 * jnp.tanh(0.5 * z) + 0.5


def _rt_resnet_kernel(x_ref, w1_ref, b1_ref, w2_ref, b2_ref, w3_ref, out_ref,
                      *, K, chunk):
    """One large batch tile of RT_ResNet.forward.

    PyTorch semantics (ResNet.forward applied K times with shared weights):
        h = sigmoid(W1 @ y + b1)     # layer1 + sigmoid
        h = sigmoid(W2 @ h + b2)     # layer2 = [Linear, Sigmoid]  (M-2 == 1)
        y = y + W3 @ h               # layer3 (no bias) + residual
    Inside the kernel the activation is carried as [sol_dim, chunk] so the
    batch sits on the 128-wide lane axis; weights stay in PyTorch's native
    [out, in] layout so every layer is a plain `W @ y` MXU matmul.
    """
    # Weights / biases: tiny, read once per grid step.  Weights arrive as
    # bf16 (MXU operands); biases stay f32 (elementwise path).
    w1 = w1_ref[...]                                 # [hidden, sol_dim] bf16
    w2 = w2_ref[...]                                 # [hidden, hidden]  bf16
    w3 = w3_ref[...]                                 # [sol_dim, hidden] bf16
    b1 = b1_ref[...]                                 # [hidden, 1] f32
    b2 = b2_ref[...]                                 # [hidden, 1] f32
    mxu_dtype = w1.dtype

    tile = x_ref.shape[0]
    n_chunks = tile // chunk                         # static

    @pl.loop(0, n_chunks)
    def _(c):
        start = pl.multiple_of(c * chunk, chunk)
        x_nat = x_ref[pl.ds(start, chunk), :]        # [chunk, sol_dim]
        # One in-kernel transpose per chunk: XLU work, otherwise idle here.
        yT = jnp.transpose(x_nat).astype(jnp.float32)  # [sol_dim, chunk]

        def block(_, yT):
            z1 = jnp.dot(w1, yT.astype(mxu_dtype),
                         preferred_element_type=jnp.float32) + b1
            h = _sigmoid_f32(z1)                     # [hidden, chunk] f32
            z2 = jnp.dot(w2, h.astype(mxu_dtype),
                         preferred_element_type=jnp.float32) + b2
            h = _sigmoid_f32(z2)                     # [hidden, chunk] f32
            return yT + jnp.dot(w3, h.astype(mxu_dtype),
                                preferred_element_type=jnp.float32)

        yT = lax.fori_loop(0, K, block, yT, unroll=True)

        # Transpose back (XLU) and store the natural-layout rows.
        out_ref[pl.ds(start, chunk), :] = jnp.transpose(yT).astype(out_ref.dtype)


def _pick_batch_tile(B, max_tile=4096):
    """Large DMA tile: biggest multiple-of-128 divisor of B (<= max_tile),
    preferring >= 2 grid steps so the 'parallel' batch axis can shard across
    both TensorCores on v7x.  Falls back to the full batch when B is small or
    not a multiple of 128 (full-extent blocks are always legal)."""
    if B % 128 == 0:
        divs = [t for t in range(128, min(B, max_tile) + 1, 128) if B % t == 0]
        if divs:
            multi = [t for t in divs if B // t >= 2]
            return max(multi) if multi else max(divs)
    return B


def _pick_chunk(batch_tile):
    """Compute sub-chunk (lane width) inside a DMA tile: 512/256/128 lanes so
    the live vreg set stays small regardless of how large the DMA tile is."""
    for c in (512, 256, 128):
        if batch_tile % c == 0:
            return c
    return batch_tile


def rt_resnet_forward(x, params, *, K, batch_tile=None, chunk=None,
                      mxu_dtype=jnp.bfloat16):
    """x: [B, sol_dim] float32.  params: PyTorch-layout ([out, in]) f32 weights."""
    B, sol_dim = x.shape
    hidden = params["w1"].shape[0]

    if batch_tile is None:
        batch_tile = _pick_batch_tile(B)
    assert B % batch_tile == 0, "batch must be divisible by batch_tile"
    if chunk is None:
        chunk = _pick_chunk(batch_tile)
    assert batch_tile % chunk == 0, "batch_tile must be divisible by chunk"
    grid = (B // batch_tile,)

    # MXU operands in bf16 (f32 accumulation); biases stay f32 for the
    # elementwise path (v5e VPU/EUP have no bf16).
    w1 = params["w1"].astype(mxu_dtype)
    w2 = params["w2"].astype(mxu_dtype)
    w3 = params["w3"].astype(mxu_dtype)
    b1 = params["b1"].astype(jnp.float32)
    b2 = params["b2"].astype(jnp.float32)

    # Advisory cost estimate (no wrapper relayouts any more -> just x in,
    # out out, plus the weights once).
    flops = 2 * K * B * (sol_dim * hidden + hidden * hidden + hidden * sol_dim)
    transcendentals = 2 * K * B * hidden
    bytes_w = sum(int(a.size) * a.dtype.itemsize for a in (w1, b1, w2, b2, w3))
    bytes_accessed = 2 * int(x.size) * x.dtype.itemsize + bytes_w

    kernel = functools.partial(_rt_resnet_kernel, K=K, chunk=chunk)

    out = pl.pallas_call(
        kernel,
        out_shape=jax.ShapeDtypeStruct((B, sol_dim), x.dtype),
        grid_spec=pltpu.PrefetchScalarGridSpec(
            num_scalar_prefetch=0,
            grid=grid,
            in_specs=[
                # x: natural layout, tiled over batch only (last dim = full
                # extent sol_dim, so the (8,128) rule is satisfied).
                pl.BlockSpec((batch_tile, sol_dim), lambda i: (i, 0)),
                # weights / biases: full arrays, same block every grid step
                # (resident, not re-DMA'd).
                pl.BlockSpec((hidden, sol_dim), lambda i: (0, 0)),   # W1 [out, in]
                pl.BlockSpec((hidden, 1), lambda i: (0, 0)),         # b1
                pl.BlockSpec((hidden, hidden), lambda i: (0, 0)),    # W2
                pl.BlockSpec((hidden, 1), lambda i: (0, 0)),         # b2
                pl.BlockSpec((sol_dim, hidden), lambda i: (0, 0)),   # W3 (no bias)
            ],
            out_specs=pl.BlockSpec((batch_tile, sol_dim), lambda i: (i, 0)),
        ),
        compiler_params=pltpu.CompilerParams(
            dimension_semantics=("parallel",),
        ),
        cost_estimate=pl.CostEstimate(
            flops=flops,
            transcendentals=transcendentals,
            bytes_accessed=bytes_accessed,
        ),
    )(x, w1, b1, w2, b2, w3)

    return out


def init_params(key, sol_dim, hidden_units):
    """Deterministic init mimicking nn.Linear defaults (U[-1/sqrt(fan_in), +]).

    Weights use PyTorch's native [out, in] layout; biases are [out, 1] so they
    broadcast along the lane (batch) axis inside the kernel."""
    k1, k2, k3, k4, k5 = jax.random.split(key, 5)

    def u(k, shape, fan_in):
        bound = 1.0 / jnp.sqrt(fan_in)
        return jax.random.uniform(k, shape, jnp.float32, -bound, bound)

    return {
        "w1": u(k1, (hidden_units, sol_dim), sol_dim),              # layer1.weight
        "b1": u(k2, (hidden_units, 1), sol_dim),                    # layer1.bias
        "w2": u(k3, (hidden_units, hidden_units), hidden_units),    # layer2[0].weight
        "b2": u(k4, (hidden_units, 1), hidden_units),               # layer2[0].bias
        "w3": u(k5, (sol_dim, hidden_units), hidden_units),         # layer3.weight
    }


def rt_resnet_reference(x, params, *, K):
    """Pure-JAX f32 reference in the natural [batch, feature] orientation."""
    y = x
    for _ in range(K):
        h = jax.nn.sigmoid(y @ params["w1"].T + params["b1"].T)
        h = jax.nn.sigmoid(h @ params["w2"].T + params["b2"].T)
        y = y + h @ params["w3"].T
    return y


if __name__ == "__main__":
    # Shapes consistent with the module: sol_dim=16, hidden_units=32, K=3
    # residual-block applications.  BATCH=1024 -> batch_tile=512 (two
    # "parallel" grid steps for v7x megacore), one 512-lane compute chunk
    # per tile.
    SOL_DIM = 16
    HIDDEN = 32
    K = 3
    BATCH = 1024

    key = jax.random.PRNGKey(0)
    kx, kp = jax.random.split(key)

    x = jax.random.normal(kx, (BATCH, SOL_DIM), dtype=jnp.float32)
    params = init_params(kp, SOL_DIM, HIDDEN)

    out = rt_resnet_forward(x, params, K=K)
    out = jax.block_until_ready(out)

    ref = rt_resnet_reference(x, params, K=K)
    assert out.shape == (BATCH, SOL_DIM), out.shape
    # Tolerance absorbs bf16 MXU operands (f32 accumulation) and the tanh-form
    # sigmoid vs XLA's f32 logistic in the reference.
    assert jnp.allclose(out, ref, atol=3e-2, rtol=2e-2), (
        float(jnp.max(jnp.abs(out - ref)))
    )

    print("KERNEL_OK")
</pallas_src>

<mosaic_0001>
module attributes {stable_mosaic.version = 11 : i64} {
  func.func @_rt_resnet_kernel(%arg0: i32, %arg1: memref<512x16xf32, #tpu.memory_space<vmem>>, %arg2: memref<32x16xbf16, #tpu.memory_space<vmem>>, %arg3: memref<32x1xf32, #tpu.memory_space<vmem>>, %arg4: memref<32x32xbf16, #tpu.memory_space<vmem>>, %arg5: memref<32x1xf32, #tpu.memory_space<vmem>>, %arg6: memref<16x32xbf16, #tpu.memory_space<vmem>>, %arg7: memref<512x16xf32, #tpu.memory_space<vmem>>) attributes {dimension_semantics = [#tpu.dimension_semantics<parallel>], iteration_bounds = array<i64: 2>, scalar_prefetch = 0 : i64, scratch_operands = 0 : i64, tpu.core_type = #tpu.core_type<tc>, window_params = [{transform_indices = @transform_0, window_bounds = array<i64: 512, 16>}, {pipeline_mode = #tpu.pipeline_mode<synchronous>, transform_indices = @transform_1, window_bounds = array<i64: 32, 16>}, {pipeline_mode = #tpu.pipeline_mode<synchronous>, transform_indices = @transform_2, window_bounds = array<i64: 32, 1>}, {pipeline_mode = #tpu.pipeline_mode<synchronous>, transform_indices = @transform_3, window_bounds = array<i64: 32, 32>}, {pipeline_mode = #tpu.pipeline_mode<synchronous>, transform_indices = @transform_4, window_bounds = array<i64: 32, 1>}, {pipeline_mode = #tpu.pipeline_mode<synchronous>, transform_indices = @transform_5, window_bounds = array<i64: 16, 32>}, {transform_indices = @transform_6, window_bounds = array<i64: 512, 16>}]} {
    %c0 = arith.constant 0 : index
    %c0_0 = arith.constant 0 : index
    %0 = vector.load %arg2[%c0, %c0_0] : memref<32x16xbf16, #tpu.memory_space<vmem>>, vector<32x16xbf16>
    %c0_1 = arith.constant 0 : index
    %c0_2 = arith.constant 0 : index
    %1 = vector.load %arg4[%c0_1, %c0_2] : memref<32x32xbf16, #tpu.memory_space<vmem>>, vector<32x32xbf16>
    %c0_3 = arith.constant 0 : index
    %c0_4 = arith.constant 0 : index
    %2 = vector.load %arg6[%c0_3, %c0_4] : memref<16x32xbf16, #tpu.memory_space<vmem>>, vector<16x32xbf16>
    %c0_5 = arith.constant 0 : index
    %c0_6 = arith.constant 0 : index
    %3 = vector.load %arg3[%c0_5, %c0_6] : memref<32x1xf32, #tpu.memory_space<vmem>>, vector<32x1xf32>
    %c0_7 = arith.constant 0 : index
    %c0_8 = arith.constant 0 : index
    %4 = vector.load %arg5[%c0_7, %c0_8] : memref<32x1xf32, #tpu.memory_space<vmem>>, vector<32x1xf32>
    %c0_i32 = arith.constant 0 : i32
    %c1_i32 = arith.constant 1 : i32
    %5 = arith.muli %c0_i32, %c1_i32 : i32
    %c0_i32_9 = arith.constant 0 : i32
    %6 = arith.addi %c0_i32_9, %5 : i32
    %c512_i32 = arith.constant 512 : i32
    %7 = arith.muli %6, %c512_i32 : i32
    %8 = tpu.assume_multiple %7, 512 : i32
    %9 = arith.index_cast %8 : i32 to index
    %c0_10 = arith.constant 0 : index
    %10 = vector.load %arg1[%9, %c0_10] : memref<512x16xf32, #tpu.memory_space<vmem>>, vector<512x16xf32>
    %11 = tpu.transpose %10, [1, 0] : vector<512x16xf32> -> vector<16x512xf32>
    %c0_i32_11 = arith.constant 0 : i32
    %12 = arith.truncf %11 : vector<16x512xf32> to vector<16x512xbf16>
    %cst = arith.constant dense<0.000000e+00> : vector<32x512xf32>
    %13 = tpu.matmul %0, %12, %cst {dimension_numbers = #tpu.dot_dimension_numbers<[1], [0], [0], [1], [0, 0, 1, 1], [], []>} : vector<32x16xbf16>, vector<16x512xbf16>, vector<32x512xf32> -> vector<32x512xf32>
    %14 = vector.broadcast %3 : vector<32x1xf32> to vector<32x512xf32>
    %15 = arith.addf %13, %14 : vector<32x512xf32>
    %cst_12 = arith.constant 5.000000e-01 : f32
    %16 = vector.broadcast %cst_12 : f32 to vector<32x512xf32>
    %17 = arith.mulf %16, %15 : vector<32x512xf32>
    %18 = math.tanh %17 : vector<32x512xf32>
    %cst_13 = arith.constant 5.000000e-01 : f32
    %19 = vector.broadcast %cst_13 : f32 to vector<32x512xf32>
    %20 = arith.mulf %19, %18 : vector<32x512xf32>
    %cst_14 = arith.constant 5.000000e-01 : f32
    %21 = vector.broadcast %cst_14 : f32 to vector<32x512xf32>
    %22 = arith.addf %20, %21 : vector<32x512xf32>
    %23 = arith.truncf %22 : vector<32x512xf32> to vector<32x512xbf16>
    %cst_15 = arith.constant dense<0.000000e+00> : vector<32x512xf32>
    %24 = tpu.matmul %1, %23, %cst_15 {dimension_numbers = #tpu.dot_dimension_numbers<[1], [0], [0], [1], [0, 0, 1, 1], [], []>} : vector<32x32xbf16>, vector<32x512xbf16>, vector<32x512xf32> -> vector<32x512xf32>
    %25 = vector.broadcast %4 : vector<32x1xf32> to vector<32x512xf32>
    %26 = arith.addf %24, %25 : vector<32x512xf32>
    %cst_16 = arith.constant 5.000000e-01 : f32
    %27 = vector.broadcast %cst_16 : f32 to vector<32x512xf32>
    %28 = arith.mulf %27, %26 : vector<32x512xf32>
    %29 = math.tanh %28 : vector<32x512xf32>
    %cst_17 = arith.constant 5.000000e-01 : f32
    %30 = vector.broadcast %cst_17 : f32 to vector<32x512xf32>
    %31 = arith.mulf %30, %29 : vector<32x512xf32>
    %cst_18 = arith.constant 5.000000e-01 : f32
    %32 = vector.broadcast %cst_18 : f32 to vector<32x512xf32>
    %33 = arith.addf %31, %32 : vector<32x512xf32>
    %34 = arith.truncf %33 : vector<32x512xf32> to vector<32x512xbf16>
    %cst_19 = arith.constant dense<0.000000e+00> : vector<16x512xf32>
    %35 = tpu.matmul %2, %34, %cst_19 {dimension_numbers = #tpu.dot_dimension_numbers<[1], [0], [0], [1], [0, 0, 1, 1], [], []>} : vector<16x32xbf16>, vector<32x512xbf16>, vector<16x512xf32> -> vector<16x512xf32>
    %36 = arith.addf %11, %35 : vector<16x512xf32>
    %c1_i32_20 = arith.constant 1 : i32
    %37 = arith.truncf %36 : vector<16x512xf32> to vector<16x512xbf16>
    %cst_21 = arith.constant dense<0.000000e+00> : vector<32x512xf32>
    %38 = tpu.matmul %0, %37, %cst_21 {dimension_numbers = #tpu.dot_dimension_numbers<[1], [0], [0], [1], [0, 0, 1, 1], [], []>} : vector<32x16xbf16>, vector<16x512xbf16>, vector<32x512xf32> -> vector<32x512xf32>
    %39 = vector.broadcast %3 : vector<32x1xf32> to vector<32x512xf32>
    %40 = arith.addf %38, %39 : vector<32x512xf32>
    %cst_22 = arith.constant 5.000000e-01 : f32
    %41 = vector.broadcast %cst_22 : f32 to vector<32x512xf32>
    %42 = arith.mulf %41, %40 : vector<32x512xf32>
    %43 = math.tanh %42 : vector<32x512xf32>
    %cst_23 = arith.constant 5.000000e-01 : f32
    %44 = vector.broadcast %cst_23 : f32 to vector<32x512xf32>
    %45 = arith.mulf %44, %43 : vector<32x512xf32>
    %cst_24 = arith.constant 5.000000e-01 : f32
    %46 = vector.broadcast %cst_24 : f32 to vector<32x512xf32>
    %47 = arith.addf %45, %46 : vector<32x512xf32>
    %48 = arith.truncf %47 : vector<32x512xf32> to vector<32x512xbf16>
    %cst_25 = arith.constant dense<0.000000e+00> : vector<32x512xf32>
    %49 = tpu.matmul %1, %48, %cst_25 {dimension_numbers = #tpu.dot_dimension_numbers<[1], [0], [0], [1], [0, 0, 1, 1], [], []>} : vector<32x32xbf16>, vector<32x512xbf16>, vector<32x512xf32> -> vector<32x512xf32>
    %50 = vector.broadcast %4 : vector<32x1xf32> to vector<32x512xf32>
    %51 = arith.addf %49, %50 : vector<32x512xf32>
    %cst_26 = arith.constant 5.000000e-01 : f32
    %52 = vector.broadcast %cst_26 : f32 to vector<32x512xf32>
    %53 = arith.mulf %52, %51 : vector<32x512xf32>
    %54 = math.tanh %53 : vector<32x512xf32>
    %cst_27 = arith.constant 5.000000e-01 : f32
    %55 = vector.broadcast %cst_27 : f32 to vector<32x512xf32>
    %56 = arith.mulf %55, %54 : vector<32x512xf32>
    %cst_28 = arith.constant 5.000000e-01 : f32
    %57 = vector.broadcast %cst_28 : f32 to vector<32x512xf32>
    %58 = arith.addf %56, %57 : vector<32x512xf32>
    %59 = arith.truncf %58 : vector<32x512xf32> to vector<32x512xbf16>
    %cst_29 = arith.constant dense<0.000000e+00> : vector<16x512xf32>
    %60 = tpu.matmul %2, %59, %cst_29 {dimension_numbers = #tpu.dot_dimension_numbers<[1], [0], [0], [1], [0, 0, 1, 1], [], []>} : vector<16x32xbf16>, vector<32x512xbf16>, vector<16x512xf32> -> vector<16x512xf32>
    %61 = arith.addf %36, %60 : vector<16x512xf32>
    %c2_i32 = arith.constant 2 : i32
    %62 = arith.truncf %61 : vector<16x512xf32> to vector<16x512xbf16>
    %cst_30 = arith.constant dense<0.000000e+00> : vector<32x512xf32>
    %63 = tpu.matmul %0, %62, %cst_30 {dimension_numbers = #tpu.dot_dimension_numbers<[1], [0], [0], [1], [0, 0, 1, 1], [], []>} : vector<32x16xbf16>, vector<16x512xbf16>, vector<32x512xf32> -> vector<32x512xf32>
    %64 = vector.broadcast %3 : vector<32x1xf32> to vector<32x512xf32>
    %65 = arith.addf %63, %64 : vector<32x512xf32>
    %cst_31 = arith.constant 5.000000e-01 : f32
    %66 = vector.broadcast %cst_31 : f32 to vector<32x512xf32>
    %67 = arith.mulf %66, %65 : vector<32x512xf32>
    %68 = math.tanh %67 : vector<32x512xf32>
    %cst_32 = arith.constant 5.000000e-01 : f32
    %69 = vector.broadcast %cst_32 : f32 to vector<32x512xf32>
    %70 = arith.mulf %69, %68 : vector<32x512xf32>
    %cst_33 = arith.constant 5.000000e-01 : f32
    %71 = vector.broadcast %cst_33 : f32 to vector<32x512xf32>
    %72 = arith.addf %70, %71 : vector<32x512xf32>
    %73 = arith.truncf %72 : vector<32x512xf32> to vector<32x512xbf16>
    %cst_34 = arith.constant dense<0.000000e+00> : vector<32x512xf32>
    %74 = tpu.matmul %1, %73, %cst_34 {dimension_numbers = #tpu.dot_dimension_numbers<[1], [0], [0], [1], [0, 0, 1, 1], [], []>} : vector<32x32xbf16>, vector<32x512xbf16>, vector<32x512xf32> -> vector<32x512xf32>
    %75 = vector.broadcast %4 : vector<32x1xf32> to vector<32x512xf32>
    %76 = arith.addf %74, %75 : vector<32x512xf32>
    %cst_35 = arith.constant 5.000000e-01 : f32
    %77 = vector.broadcast %cst_35 : f32 to vector<32x512xf32>
    %78 = arith.mulf %77, %76 : vector<32x512xf32>
    %79 = math.tanh %78 : vector<32x512xf32>
    %cst_36 = arith.constant 5.000000e-01 : f32
    %80 = vector.broadcast %cst_36 : f32 to vector<32x512xf32>
    %81 = arith.mulf %80, %79 : vector<32x512xf32>
    %cst_37 = arith.constant 5.000000e-01 : f32
    %82 = vector.broadcast %cst_37 : f32 to vector<32x512xf32>
    %83 = arith.addf %81, %82 : vector<32x512xf32>
    %84 = arith.truncf %83 : vector<32x512xf32> to vector<32x512xbf16>
    %cst_38 = arith.constant dense<0.000000e+00> : vector<16x512xf32>
    %85 = tpu.matmul %2, %84, %cst_38 {dimension_numbers = #tpu.dot_dimension_numbers<[1], [0], [0], [1], [0, 0, 1, 1], [], []>} : vector<16x32xbf16>, vector<32x512xbf16>, vector<16x512xf32> -> vector<16x512xf32>
    %86 = arith.addf %61, %85 : vector<16x512xf32>
    %87 = tpu.transpose %86, [1, 0] : vector<16x512xf32> -> vector<512x16xf32>
    %88 = arith.index_cast %8 : i32 to index
    %c0_39 = arith.constant 0 : index
    %89 = vector.load %arg7[%88, %c0_39] : memref<512x16xf32, #tpu.memory_space<vmem>>, vector<512x16xf32>
    tpu.vector_store %arg7[%88, %c0_39], %87 {strides = array<i32>} : memref<512x16xf32, #tpu.memory_space<vmem>>, vector<512x16xf32>,
    %c1_i32_40 = arith.constant 1 : i32
    return
  }
  func.func @transform_0(%arg0: i32) -> (i32, i32) {
    %c0_i32 = arith.constant 0 : i32
    %c0_i32_0 = arith.constant 0 : i32
    return %arg0, %c0_i32 : i32, i32
  }
  func.func @transform_1(%arg0: i32) -> (i32, i32) {
    %c0_i32 = arith.constant 0 : i32
    %c0_i32_0 = arith.constant 0 : i32
    %c0_i32_1 = arith.constant 0 : i32
    return %c0_i32, %c0_i32_0 : i32, i32
  }
  func.func @transform_2(%arg0: i32) -> (i32, i32) {
    %c0_i32 = arith.constant 0 : i32
    %c0_i32_0 = arith.constant 0 : i32
    %c0_i32_1 = arith.constant 0 : i32
    return %c0_i32, %c0_i32_0 : i32, i32
  }
  func.func @transform_3(%arg0: i32) -> (i32, i32) {
    %c0_i32 = arith.constant 0 : i32
    %c0_i32_0 = arith.constant 0 : i32
    %c0_i32_1 = arith.constant 0 : i32
    return %c0_i32, %c0_i32_0 : i32, i32
  }
  func.func @transform_4(%arg0: i32) -> (i32, i32) {
    %c0_i32 = arith.constant 0 : i32
    %c0_i32_0 = arith.constant 0 : i32
    %c0_i32_1 = arith.constant 0 : i32
    return %c0_i32, %c0_i32_0 : i32, i32
  }
  func.func @transform_5(%arg0: i32) -> (i32, i32) {
    %c0_i32 = arith.constant 0 : i32
    %c0_i32_0 = arith.constant 0 : i32
    %c0_i32_1 = arith.constant 0 : i32
    return %c0_i32, %c0_i32_0 : i32, i32
  }
  func.func @transform_6(%arg0: i32) -> (i32, i32) {
    %c0_i32 = arith.constant 0 : i32
    %c0_i32_0 = arith.constant 0 : i32
    return %arg0, %c0_i32 : i32, i32
  }
}

</mosaic_0001>

<bundles_post_ra>
// kernel: tpu_custom_call.1
= control target key start
LH: loop header
LB: loop body
LE: loop exit
PB: predicated region body
PF: predicated region fallthrough
CT: control target
= control target key end

     0   :  { %s2462_s21 = smov 0   ;;  %s3036_s0 = inlined_call_operand.vmem [shape: f32[1024,16], index: 0, kind: input, shape index: {}]   ;;  %s3037_s1 = inlined_call_operand.vmem [shape: bf16[32,16], index: 1, kind: input, shape index: {}]   ;;  %s3038_s2 = inlined_call_operand.vmem [shape: f32[32,1], index: 2, kind: input, shape index: {}]   ;;  %s3039_s3 = inlined_call_operand.vmem [shape: bf16[32,32], index: 3, kind: input, shape index: {}]   ;;  %s3040_s4 = inlined_call_operand.vmem [shape: f32[32,1], index: 4, kind: input, shape index: {}]   ;;  %s3041_s5 = inlined_call_operand.vmem [shape: bf16[16,32], index: 5, kind: input, shape index: {}]   ;;  %s3042_s6 = inlined_call_operand.vmem [shape: f32[1024,16], index: 6, kind: output, shape index: {}]  }
   0x1 LB: > { %s2158_s22 = sadd.s32 4294967295, %s2424_s21   ;;  %p2162_p0 = scmp.ge.s32.totalorder %s2424_s21, 1  ;;  %s2424_s21 = sphi %s2462_s21, %s16_s21  }
   0x2   : > { %p213_p1 = scmp.lt.s32.totalorder %s2424_s21, 3 }
   0x4   : > { %p214_p2 = pnand %p2162_p0, %p213_p1 }
   0x5   : > { %s2163_s23 = sshll.u32 (!%p214_p2), %s2158_s22, 6  ;;  %v2426_v40 = vmov (!%p214_p2), 0   ;;  %vm500_vm0 = vcmask (!%p214_p2), 130048   ;;  %vm715_vm1 = vcmask (!%p214_p2), 261120  }
   0x6   : > { %217 = sbr.rel (%p214_p2) target bundleno = 2641 (0xa51), region = 44  ;;  %p244_p3 = scmp.lt.s32.totalorder (!%p214_p2), %s2163_s23, 127  ;;  %539 = vmatprep.mubr.bf16.mxu0 (!%p214_p2), %v2426_v40  ;;  %592 = vmatprep.mubr.bf16.mxu1 (!%p214_p2), %v2426_v40 }
   0xd   : > { %s3044_s23 = smov (!%p244_p3, %s2163_s23), 127 }
   0xe   : > { %s2164_s24 = sshll.u32 %s3044_s23, 3 }
   0xf   : > { %s2478_s27 = scalar_lea.vmem %s3036_s0, %s2164_s24  ;;  %s2903_s22 = scalar_lea.vmem %s3042_s6, %s2164_s24 }
  0x10   : > { %v322_v0 = vld [vmem:[%s2478_s27 + $0x180] sm:$0xff]  ;;  %v323_v2 = vld [vmem:[%s2478_s27 + $0x188] sm:$0xff]  ;;  %v324_v4 = vld [vmem:[%s2478_s27 + $0x190] sm:$0xff] }
  0x11   : > { %v290_v1 = vld [vmem:[%s2478_s27 + $0x80] sm:$0xff]  ;;  %434 = vxpose.xlu1.b32.start [1/16] (narrow) %v322_v0, 16  ;;  %v291_v3 = vld [vmem:[%s2478_s27 + $0x88] sm:$0xff]  ;;  %v292_v5 = vld [vmem:[%s2478_s27 + $0x90] sm:$0xff] }
  0x12   : > { %370 = vxpose.xlu0.b32.start [1/16] (narrow) %v290_v1, 16  ;;  %v325_v6 = vld [vmem:[%s2478_s27 + $0x198] sm:$0xff]  ;;  %v326_v8 = vld [vmem:[%s2478_s27 + $0x1a0] sm:$0xff]  ;;  %v327_v10 = vld [vmem:[%s2478_s27 + $0x1a8] sm:$0xff] }
  0x13   : > { %v293_v7 = vld [vmem:[%s2478_s27 + $0x98] sm:$0xff]  ;;  %v294_v9 = vld [vmem:[%s2478_s27 + $0xa0] sm:$0xff]  ;;  %v295_v11 = vld [vmem:[%s2478_s27 + $0xa8] sm:$0xff] }
  0x14   : > { %v328_v12 = vld [vmem:[%s2478_s27 + $0x1b0] sm:$0xff]  ;;  %v329_v14 = vld [vmem:[%s2478_s27 + $0x1b8] sm:$0xff]  ;;  %v330_v16 = vld [vmem:[%s2478_s27 + $0x1c0] sm:$0xff] }
  0x15   : > { %435 = vxpose.xlu1.b32.cont [2/16] (narrow) %v323_v2, 16  ;;  %v296_v13 = vld [vmem:[%s2478_s27 + $0xb0] sm:$0xff]  ;;  %v297_v15 = vld [vmem:[%s2478_s27 + $0xb8] sm:$0xff]  ;;  %v298_v17 = vld [vmem:[%s2478_s27 + $0xc0] sm:$0xff] }
  0x16   : > { %371 = vxpose.xlu0.b32.cont [2/16] (narrow) %v291_v3, 16  ;;  %v331_v18 = vld [vmem:[%s2478_s27 + $0x1c8] sm:$0xff]  ;;  %v332_v20 = vld [vmem:[%s2478_s27 + $0x1d0] sm:$0xff]  ;;  %v333_v22 = vld [vmem:[%s2478_s27 + $0x1d8] sm:$0xff] }
  0x17   : > { %v299_v19 = vld [vmem:[%s2478_s27 + $0xc8] sm:$0xff]  ;;  %v300_v21 = vld [vmem:[%s2478_s27 + $0xd0] sm:$0xff]  ;;  %v301_v23 = vld [vmem:[%s2478_s27 + $0xd8] sm:$0xff] }
  0x18   : > { %v334_v24 = vld [vmem:[%s2478_s27 + $0x1e0] sm:$0xff]  ;;  %v335_v26 = vld [vmem:[%s2478_s27 + $0x1e8] sm:$0xff]  ;;  %v336_v28 = vld [vmem:[%s2478_s27 + $0x1f0] sm:$0xff] }
  0x19   : > { %436 = vxpose.xlu1.b32.cont [3/16] (narrow) %v324_v4, 16  ;;  %v302_v25 = vld [vmem:[%s2478_s27 + $0xe0] sm:$0xff]  ;;  %v303_v27 = vld [vmem:[%s2478_s27 + $0xe8] sm:$0xff]  ;;  %v304_v29 = vld [vmem:[%s2478_s27 + $0xf0] sm:$0xff] }
  0x1a   : > { %372 = vxpose.xlu0.b32.cont [3/16] (narrow) %v292_v5, 16  ;;  %v337_v30 = vld [vmem:[%s2478_s27 + $0x1f8] sm:$0xff]  ;;  %v306_v32 = vld [vmem:[%s2478_s27 + $0x100] sm:$0xff]  ;;  %v307_v34 = vld [vmem:[%s2478_s27 + $0x108] sm:$0xff] }
  0x1b   : > { %v305_v31 = vld [vmem:[%s2478_s27 + $0xf8] sm:$0xff]  ;;  %v274_v33 = vld [vmem:[%s2478_s27] sm:$0xff]  ;;  %v275_v35 = vld [vmem:[%s2478_s27 + $0x8] sm:$0xff] }
  0x1c   : > { %v308_v36 = vld [vmem:[%s2478_s27 + $0x110] sm:$0xff]  ;;  %v309_v38 = vld [vmem:[%s2478_s27 + $0x118] sm:$0xff]  ;;  %v310_v41 = vld [vmem:[%s2478_s27 + $0x120] sm:$0xff] }
  0x1d   : > { %437 = vxpose.xlu1.b32.cont [4/16] (narrow) %v325_v6, 16  ;;  %v276_v37 = vld [vmem:[%s2478_s27 + $0x10] sm:$0xff]  ;;  %v277_v39 = vld [vmem:[%s2478_s27 + $0x18] sm:$0xff]  ;;  %v278_v42 = vld [vmem:[%s2478_s27 + $0x20] sm:$0xff] }
  0x1e   : > { %373 = vxpose.xlu0.b32.cont [4/16] (narrow) %v293_v7, 16  ;;  %v311_v43 = vld [vmem:[%s2478_s27 + $0x128] sm:$0xff]  ;;  %v312_v45 = vld [vmem:[%s2478_s27 + $0x130] sm:$0xff]  ;;  %v313_v47 = vld [vmem:[%s2478_s27 + $0x138] sm:$0xff] }
  0x1f   : > { %v279_v44 = vld [vmem:[%s2478_s27 + $0x28] sm:$0xff]  ;;  %v280_v46 = vld [vmem:[%s2478_s27 + $0x30] sm:$0xff]  ;;  %v281_v48 = vld [vmem:[%s2478_s27 + $0x38] sm:$0xff] }
  0x20   : > { %v314_v49 = vld [vmem:[%s2478_s27 + $0x140] sm:$0xff]  ;;  %v315_v51 = vld [vmem:[%s2478_s27 + $0x148] sm:$0xff]  ;;  %v316_v53 = vld [vmem:[%s2478_s27 + $0x150] sm:$0xff] }
  0x21   : > { %438 = vxpose.xlu1.b32.cont [5/16] (narrow) %v326_v8, 16  ;;  %v282_v50 = vld [vmem:[%s2478_s27 + $0x40] sm:$0xff]  ;;  %v283_v52 = vld [vmem:[%s2478_s27 + $0x48] sm:$0xff]  ;;  %v284_v54 = vld [vmem:[%s2478_s27 + $0x50] sm:$0xff] }
  0x22   : > { %374 = vxpose.xlu0.b32.cont [5/16] (narrow) %v294_v9, 16  ;;  %v317_v55 = vld [vmem:[%s2478_s27 + $0x158] sm:$0xff]  ;;  %v318_v57 = vld [vmem:[%s2478_s27 + $0x160] sm:$0xff]  ;;  %v319_v59 = vld [vmem:[%s2478_s27 + $0x168] sm:$0xff] }
  0x23   : > { %v285_v56 = vld [vmem:[%s2478_s27 + $0x58] sm:$0xff]  ;;  %v286_v58 = vld [vmem:[%s2478_s27 + $0x60] sm:$0xff]  ;;  %v287_v60 = vld [vmem:[%s2478_s27 + $0x68] sm:$0xff] }
  0x24   : > { %v320_v61 = vld [vmem:[%s2478_s27 + $0x170] sm:$0xff]  ;;  %v321_v63 = vld [vmem:[%s2478_s27 + $0x178] sm:$0xff]  ;;  %v267_v7 = vld [vmem:[%s3038_s2 + $0x8] sm:$0xff] }
  0x25   : > { %439 = vxpose.xlu1.b32.cont [6/16] (narrow) %v327_v10, 16  ;;  %v288_v62 = vld [vmem:[%s2478_s27 + $0x70] sm:$0xff]  ;;  %v289_v0 = vld [vmem:[%s2478_s27 + $0x78] sm:$0xff]  ;;  %v266_v10 = vld [vmem:[%s3038_s2] sm:$0xff] }
  0x26   : > { %375 = vxpose.xlu0.b32.cont [6/16] (narrow) %v295_v11, 16  ;;  %v268_v8 = vld [vmem:[%s3038_s2 + $0x10] sm:$0xff]  ;;  %v269_v9 = vld [vmem:[%s3038_s2 + $0x18] sm:$0xff]  ;;  %v270_v11 = vld [vmem:[%s3040_s4] sm:$0xff] }
  0x29   : > { %440 = vxpose.xlu1.b32.cont [7/16] (narrow) %v328_v12, 16  ;;  %v271_v12 = vld [vmem:[%s3040_s4 + $0x8] sm:$0xff] }
  0x2a   : > { %376 = vxpose.xlu0.b32.cont [7/16] (narrow) %v296_v13, 16  ;;  %v272_v13 = vld [vmem:[%s3040_s4 + $0x10] sm:$0xff] }
  0x2d   : > { %441 = vxpose.xlu1.b32.cont [8/16] (narrow) %v329_v14, 16  ;;  %v273_v14 = vld [vmem:[%s3040_s4 + $0x18] sm:$0xff] }
  0x2e   : > { %377 = vxpose.xlu0.b32.cont [8/16] (narrow) %v297_v15, 16 }
  0x31   : > { %442 = vxpose.xlu1.b32.cont [9/16] (narrow) %v330_v16, 16 }
  0x32   : > { %378 = vxpose.xlu0.b32.cont [9/16] (narrow) %v298_v17, 16 }
  0x35   : > { %443 = vxpose.xlu1.b32.cont [10/16] (narrow) %v331_v18, 16 }
  0x36   : > { %379 = vxpose.xlu0.b32.cont [10/16] (narrow) %v299_v19, 16 }
  0x39   : > { %444 = vxpose.xlu1.b32.cont [11/16] (narrow) %v332_v20, 16 }
  0x3a   : > { %380 = vxpose.xlu0.b32.cont [11/16] (narrow) %v300_v21, 16  ;;  %v2599_v21 = vld [vmem:[%s3037_s1] sm:$0xff]  }
  0x3d   : > { %445 = vxpose.xlu1.b32.cont [12/16] (narrow) %v333_v22, 16  ;;  %v2610_v22 = vld [vmem:[%s3037_s1 + $0x8] sm:$0xff]  }
  0x3e   : > { %381 = vxpose.xlu0.b32.cont [12/16] (narrow) %v301_v23, 16 }
  0x41   : > { %446 = vxpose.xlu1.b32.cont [13/16] (narrow) %v334_v24, 16 }
  0x42   : > { %382 = vxpose.xlu0.b32.cont [13/16] (narrow) %v302_v25, 16 }
  0x45   : > { %447 = vxpose.xlu1.b32.cont [14/16] (narrow) %v335_v26, 16 }
  0x46   : > { %383 = vxpose.xlu0.b32.cont [14/16] (narrow) %v303_v27, 16 }
  0x49   : > { %448 = vxpose.xlu1.b32.cont [15/16] (narrow) %v336_v28, 16 }
  0x4a   : > { %384 = vxpose.xlu0.b32.cont [15/16] (narrow) %v304_v29, 16 }
  0x4d   : > { %449 = vxpose.xlu1.b32.end [16/16] (narrow) %v337_v30, 16 }
  0x4e   : > { %385 = vxpose.xlu0.b32.end [16/16] (narrow) %v305_v31, 16 }
  0x51   : > { %402 = vxpose.xlu1.b32.start [1/16] (narrow) %v306_v32, 16 }
  0x52   : > { %338 = vxpose.xlu0.b32.start [1/16] (narrow) %v274_v33, 16 }
  0x55   : > { %403 = vxpose.xlu1.b32.cont [2/16] (narrow) %v307_v34, 16 }
  0x56   : > { %339 = vxpose.xlu0.b32.cont [2/16] (narrow) %v275_v35, 16 }
  0x59   : > { %404 = vxpose.xlu1.b32.cont [3/16] (narrow) %v308_v36, 16 }
  0x5a   : > { %340 = vxpose.xlu0.b32.cont [3/16] (narrow) %v276_v37, 16 }
  0x5d   : > { %405 = vxpose.xlu1.b32.cont [4/16] (narrow) %v309_v38, 16 }
  0x5e   : > { %341 = vxpose.xlu0.b32.cont [4/16] (narrow) %v277_v39, 16 }
  0x61   : > { %406 = vxpose.xlu1.b32.cont [5/16] (narrow) %v310_v41, 16 }
  0x62   : > { %342 = vxpose.xlu0.b32.cont [5/16] (narrow) %v278_v42, 16 }
  0x65   : > { %407 = vxpose.xlu1.b32.cont [6/16] (narrow) %v311_v43, 16 }
  0x66   : > { %343 = vxpose.xlu0.b32.cont [6/16] (narrow) %v279_v44, 16 }
  0x69   : > { %408 = vxpose.xlu1.b32.cont [7/16] (narrow) %v312_v45, 16 }
  0x6a   : > { %344 = vxpose.xlu0.b32.cont [7/16] (narrow) %v280_v46, 16 }
  0x6d   : > { %409 = vxpose.xlu1.b32.cont [8/16] (narrow) %v313_v47, 16 }
  0x6e   : > { %345 = vxpose.xlu0.b32.cont [8/16] (narrow) %v281_v48, 16 }
  0x71   : > { %410 = vxpose.xlu1.b32.cont [9/16] (narrow) %v314_v49, 16 }
  0x72   : > { %346 = vxpose.xlu0.b32.cont [9/16] (narrow) %v282_v50, 16 }
  0x75   : > { %411 = vxpose.xlu1.b32.cont [10/16] (narrow) %v315_v51, 16 }
  0x76   : > { %347 = vxpose.xlu0.b32.cont [10/16] (narrow) %v283_v52, 16 }
  0x79   : > { %412 = vxpose.xlu1.b32.cont [11/16] (narrow) %v316_v53, 16 }
  0x7a   : > { %348 = vxpose.xlu0.b32.cont [11/16] (narrow) %v284_v54, 16 }
  0x7d   : > { %413 = vxpose.xlu1.b32.cont [12/16] (narrow) %v317_v55, 16 }
  0x7e   : > { %349 = vxpose.xlu0.b32.cont [12/16] (narrow) %v285_v56, 16 }
  0x81   : > { %414 = vxpose.xlu1.b32.cont [13/16] (narrow) %v318_v57, 16 }
  0x82   : > { %350 = vxpose.xlu0.b32.cont [13/16] (narrow) %v286_v58, 16 }
  0x85   : > { %415 = vxpose.xlu1.b32.cont [14/16] (narrow) %v319_v59, 16 }
  0x86   : > { %351 = vxpose.xlu0.b32.cont [14/16] (narrow) %v287_v60, 16 }
  0x89   : > { %416 = vxpose.xlu1.b32.cont [15/16] (narrow) %v320_v61, 16 }
  0x8a   : > { %352 = vxpose.xlu0.b32.cont [15/16] (narrow) %v288_v62, 16 }
  0x8d   : > { %417 = vxpose.xlu1.b32.end [16/16] (narrow) %v321_v63, 16 }
  0x8e   : > { %353 = vxpose.xlu0.b32.end [16/16] (narrow) %v289_v0, 16 }
  0x91   : > { %v2548_v2 = vpop.trf.xlu1 }
  0x92   : > { %v2546_v1 = vpop.trf.xlu0 }
  0x95   : > { %v2552_v4 = vpop.trf.xlu1 }
  0x96   : > { %v2550_v3 = vpop.trf.xlu0  ;;  %v469_v6 = vpack.c.bf16 %v2552_v4, %v2548_v2 }
  0x97   : > { %v467_v5 = vpack.c.bf16 %v2550_v3, %v2546_v1 }
  0x98   : > { %560 = vmatprep.subr.bf16.mxu1 %v469_v6 }
  0x99   : > { %507 = vmatprep.subr.bf16.mxu0 %v467_v5 }
  0xab   : > { %2215 = vset.pattern.permute.xlu1 %v2426_v40 }
  0xac   : > { %477 = vperm.xlu1 %2215, %v267_v7  }
  0xb0   : > { %482 = vperm.xlu1 %2215, %v268_v8  }
  0xb4   : > { %487 = vperm.xlu1 %2215, %v269_v9  }
  0xb7   : > { %2214 = vset.pattern.permute.xlu0 %v2426_v40 }
  0xb8   : > { %472 = vperm.xlu0 %2214, %v266_v10   ;;  %687 = vperm.xlu1 %2215, %v270_v11  }
  0xbc   : > { %692 = vperm.xlu0 %2214, %v271_v12   ;;  %697 = vperm.xlu1 %2215, %v272_v13  }
  0xc0   : > { %702 = vperm.xlu0 %2214, %v273_v14  }
  0xd1   : > { %v2584_v15 = vpop.trf.xlu1 }
  0xd2   : > { %v2586_v16 = vpop.trf.xlu0 }
  0xd5   : > { %v2588_v17 = vpop.trf.xlu1 }
  0xd6   : > { %v2590_v18 = vpop.trf.xlu0  ;;  %v468_v20 = vpack.c.bf16 %v2588_v17, %v2584_v15 }
  0xd7   : > { %v466_v19 = vpack.c.bf16 %v2590_v18, %v2586_v16 }
  0xd8   : > { %561 = vmatpush1.bf16.msra.mxu1 %v468_v20 }
  0xd9   : > { %508 = vmatpush1.bf16.msra.mxu0 %v466_v19 }
  0xdb   : > { %2171 = vmatmul.mubr.msk.bf16.vlgmr.msra.gmra.mrb[0].mxu1 %vm500_vm0, %v2599_v21 }
  0xdc   : > { %2169 = vmatmul.mubr.msk.bf16.vlgmr.msra.gmra.mrb[0].mxu0 %vm500_vm0, %v2599_v21  ;;  %602 = vmatprep.mubr.bf16.mxu1 %v2426_v40 }
  0xdd   : > { %549 = vmatprep.mubr.bf16.mxu0 %v2426_v40 }
  0xe3   : > { %2172 = vmatmul.mubr.msk.bf16.gmra.mrb[4].mxu1 %vm500_vm0, %v2610_v22 }
  0xe4   : > { %2170 = vmatmul.mubr.msk.bf16.gmra.mrb[4].mxu0 %vm500_vm0, %v2610_v22  ;;  %807 = vmatprep.mubr.bf16.mxu1 %v2426_v40 }
  0xe5   : > { %754 = vmatprep.mubr.bf16.mxu0 %v2426_v40 }
 0x12b   : > { %v2618_v23 = vpop.permute.xlu1 %477 }
 0x12f   : > { %v2622_v25 = vpop.permute.xlu1 %482 }
 0x133   : > { %v2632_v49 = vpop.permute.xlu1 %487 }
 0x137   : > { %v2620_v24 = vpop.permute.xlu0 %472 }
 0x1ae   : > { %v594_v27 = vpop.f32.mrb[0].mxu1 }
 0x1af   : > { %v541_v26 = vpop.f32.mrb[0].mxu0  ;;  %v595_v29 = vadd.f32 %v594_v27, %v2620_v24  ;;  %v596_v31 = vpop.f32.mrb[1].mxu1 }
 0x1b0   : > { %v542_v28 = vadd.f32 %v541_v26, %v2620_v24  ;;  %v543_v30 = vpop.f32.mrb[1].mxu0  ;;  %v597_v33 = vadd.f32 %v596_v31, %v2620_v24  ;;  %v598_v35 = vpop.f32.mrb[2].mxu1 }
 0x1b1   : > { %v544_v32 = vadd.f32 %v543_v30, %v2620_v24  ;;  %v545_v34 = vpop.f32.mrb[2].mxu0  ;;  %v615_v37 = vmul.f32 0.5, %v595_v29  ;;  %v599_v39 = vadd.f32 %v598_v35, %v2618_v23  ;;  %v600_v41 = vpop.f32.mrb[3].mxu1 }
 0x1b2   : > { %v613_v36 = vmul.f32 0.5, %v542_v28  ;;  %v546_v38 = vadd.f32 %v545_v34, %v2618_v23  ;;  %v547_v42 = vpop.f32.mrb[3].mxu0  ;;  %v616_v44 = vmul.f32 0.5, %v597_v33  ;;  %v601_v45 = vadd.f32 %v600_v41, %v2618_v23 }
 0x1b3   : > { %v614_v43 = vmul.f32 0.5, %v544_v32  ;;  %v548_v46 = vadd.f32 %v547_v42, %v2618_v23  ;;  %v619_v48 = vmul.f32 0.5, %v599_v39 }
 0x1b4   : > { %2221 = vtanh.f32 %v613_v36  ;;  %v617_v47 = vmul.f32 0.5, %v546_v38  ;;  %v620_v50 = vmul.f32 0.5, %v601_v45 }
 0x1b5   : > { %2223 = vtanh.f32 %v615_v37  ;;  %v618_v51 = vmul.f32 0.5, %v548_v46 }
 0x1b6   : > { %2225 = vtanh.f32 %v614_v43  ;;  %v604_v53 = vpop.f32.mrb[4].mxu1 }
 0x1b7   : > { %2227 = vtanh.f32 %v616_v44  ;;  %v551_v52 = vpop.f32.mrb[4].mxu0  ;;  %v605_v55 = vadd.f32 %v604_v53, %v2622_v25  ;;  %v606_v57 = vpop.f32.mrb[5].mxu1 }
 0x1b8   : > { %2229 = vtanh.f32 %v617_v47  ;;  %v552_v54 = vadd.f32 %v551_v52, %v2622_v25  ;;  %v553_v56 = vpop.f32.mrb[5].mxu0  ;;  %v607_v59 = vadd.f32 %v606_v57, %v2622_v25  ;;  %v608_v61 = vpop.f32.mrb[6].mxu1 }
 0x1b9   : > { %2231 = vtanh.f32 %v619_v48  ;;  %v554_v58 = vadd.f32 %v553_v56, %v2622_v25  ;;  %v555_v60 = vpop.f32.mrb[6].mxu0  ;;  %v623_v63 = vmul.f32 0.5, %v605_v55  ;;  %v610_v6 = vpop.f32.mrb[7].mxu1  ;;  %v609_v9 = vadd.f32 %v608_v61, %v2632_v49 }
 0x1ba   : > { %2233 = vtanh.f32 %v620_v50  ;;  %v621_v62 = vmul.f32 0.5, %v552_v54  ;;  %v556_v0 = vadd.f32 %v555_v60, %v2632_v49  ;;  %v557_v5 = vpop.f32.mrb[7].mxu0  ;;  %v624_v8 = vmul.f32 0.5, %v607_v59 }
 0x1bb   : > { %2235 = vtanh.f32 %v618_v51  ;;  %v622_v7 = vmul.f32 0.5, %v554_v58  ;;  %v558_v11 = vadd.f32 %v557_v5, %v2632_v49  ;;  %v611_v12 = vadd.f32 %v610_v6, %v2632_v49 }
 0x1bc   : > { %2237 = vtanh.f32 %v621_v62  ;;  %v625_v10 = vmul.f32 0.5, %v556_v0  ;;  %v627_v13 = vmul.f32 0.5, %v609_v9 }
 0x1bd   : > { %2239 = vtanh.f32 %v623_v63  ;;  %v626_v19 = vmul.f32 0.5, %v558_v11  ;;  %v628_v26 = vmul.f32 0.5, %v611_v12 }
 0x1be   : > { %v2222_v14 = vpop.eup %2221  ;;  %2241 = vtanh.f32 %v622_v7 }
 0x1bf   : > { %v2224_v20 = vpop.eup %2223  ;;  %2243 = vtanh.f32 %v624_v8  ;;  %v645_v30 = vmul.f32 0.5, %v2222_v14 }
 0x1c0   : > { %v2226_v27 = vpop.eup %2225  ;;  %v647_v28 = vmul.f32 0.5, %v2224_v20  ;;  %2245 = vtanh.f32 %v625_v10 }
 0x1c1   : > { %v2228_v29 = vpop.eup %2227  ;;  %2247 = vtanh.f32 %v627_v13  ;;  %v646_v37 = vmul.f32 0.5, %v2226_v27  ;;  %v661_v41 = vadd.f32 0.5, %v645_v30 }
 0x1c2   : > { %v2230_v31 = vpop.eup %2229  ;;  %v648_v32 = vmul.f32 0.5, %v2228_v29  ;;  %2249 = vtanh.f32 %v626_v19  ;;  %v663_v36 = vadd.f32 0.5, %v647_v28 }
 0x1c3   : > { %v2232_v33 = vpop.eup %2231  ;;  %v649_v34 = vmul.f32 0.5, %v2230_v31  ;;  %2251 = vtanh.f32 %v628_v26  ;;  %v662_v53 = vadd.f32 0.5, %v646_v37 }
 0x1c4   : > { %v2234_v35 = vpop.eup %2233  ;;  %v651_v38 = vmul.f32 0.5, %v2232_v33  ;;  %v664_v42 = vadd.f32 0.5, %v648_v32  ;;  %v2645_v32 = vld [vmem:[%s3039_s3] sm:$0xff]   ;;  %v2656_v33 = vld [vmem:[%s3039_s3 + $0x8] sm:$0xff]  }
 0x1c5   : > { %v2236_v39 = vpop.eup %2235  ;;  %v665_v43 = vadd.f32 0.5, %v649_v34  ;;  %v652_v44 = vmul.f32 0.5, %v2234_v35  ;;  %v2664_v34 = vpop.permute.xlu1 %687 }
 0x1c6   : > { %v2238_v45 = vpop.eup %2237  ;;  %v667_v46 = vadd.f32 0.5, %v651_v38  ;;  %v650_v47 = vmul.f32 0.5, %v2236_v39  ;;  %v2666_v35 = vpop.permute.xlu0 %692 }
 0x1c7   : > { %v2240_v48 = vpop.eup %2239  ;;  %v677_v50 = vpack.c.bf16 %v665_v43, %v661_v41  ;;  %v668_v51 = vadd.f32 0.5, %v652_v44  ;;  %v653_v57 = vmul.f32 0.5, %v2238_v45 }
 0x1c8   : > { %v2242_v52 = vpop.eup %2241  ;;  %v679_v54 = vpack.c.bf16 %v667_v46, %v663_v36  ;;  %v666_v55 = vadd.f32 0.5, %v650_v47  ;;  %v655_v60 = vmul.f32 0.5, %v2240_v48 }
 0x1c9   : > { %v2244_v56 = vpop.eup %2243  ;;  %v680_v58 = vpack.c.bf16 %v668_v51, %v664_v42  ;;  %v654_v63 = vmul.f32 0.5, %v2242_v52  ;;  %v669_v9 = vadd.f32 0.5, %v653_v57 }
 0x1ca   : > { %v2246_v59 = vpop.eup %2245  ;;  %v678_v61 = vpack.c.bf16 %v666_v55, %v662_v53  ;;  %v656_v6 = vmul.f32 0.5, %v2244_v56  ;;  %v671_v12 = vadd.f32 0.5, %v655_v60  ;;  %v2676_v60 = vpop.permute.xlu1 %697 }
 0x1cb   : > { %v2248_v62 = vpop.eup %2247  ;;  %v657_v0 = vmul.f32 0.5, %v2246_v59  ;;  %775 = vmatprep.subr.bf16.mxu1 %v680_v58  ;;  %v670_v19 = vadd.f32 0.5, %v654_v63 }
 0x1cc   : > { %v2250_v5 = vpop.eup %2249  ;;  %v659_v7 = vmul.f32 0.5, %v2248_v62  ;;  %722 = vmatprep.subr.bf16.mxu0 %v678_v61  ;;  %776 = vmatpush1.bf16.msra.mxu1 %v679_v54  ;;  %v672_v27 = vadd.f32 0.5, %v656_v6  ;;  %v2678_v62 = vpop.permute.xlu0 %702 }
 0x1cd   : > { %v2252_v8 = vpop.eup %2251  ;;  %v673_v10 = vadd.f32 0.5, %v657_v0  ;;  %v658_v11 = vmul.f32 0.5, %v2250_v5  ;;  %723 = vmatpush1.bf16.msra.mxu0 %v677_v50 }
 0x1ce   : > { %v675_v13 = vadd.f32 0.5, %v659_v7  ;;  %v660_v14 = vmul.f32 0.5, %v2252_v8 }
 0x1cf   : > { %v681_v20 = vpack.c.bf16 %v673_v10, %v669_v9  ;;  %v674_v26 = vadd.f32 0.5, %v658_v11 }
 0x1d0   : > { %v683_v28 = vpack.c.bf16 %v675_v13, %v671_v12  ;;  %v676_v29 = vadd.f32 0.5, %v660_v14 }
 0x1d1   : > { %v682_v30 = vpack.c.bf16 %v674_v26, %v670_v19 }
 0x1d2   : > { %v684_v31 = vpack.c.bf16 %v676_v29, %v672_v27 }
 0x1d3   : > { %724 = vmatprep.subr.bf16.mxu0 %v682_v30 }
 0x1d4   : > { %777 = vmatprep.subr.bf16.mxu1 %v684_v31  ;;  %725 = vmatpush1.bf16.msra.mxu0 %v681_v20 }
 0x1d5   : > { %778 = vmatpush1.bf16.msra.mxu1 %v683_v28 }
 0x1d7   : > { %2175 = vmatmul.mubr.msk.bf16.vlgmr.msra.gmra.mrb[8].mxu0 %vm715_vm1, %v2645_v32 }
 0x1d8   : > { %2177 = vmatmul.mubr.msk.bf16.vlgmr.msra.gmra.mrb[8].mxu1 %vm715_vm1, %v2645_v32  ;;  %764 = vmatprep.mubr.bf16.mxu0 %v2426_v40 }
 0x1d9   : > { %817 = vmatprep.mubr.bf16.mxu1 %v2426_v40 }
 0x1df   : > { %2176 = vmatmul.mubr.msk.bf16.gmra.mrb[12].mxu0 %vm715_vm1, %v2656_v33 }
 0x1e0   : > { %2178 = vmatmul.mubr.msk.bf16.gmra.mrb[12].mxu1 %vm715_vm1, %v2656_v33  ;;  %940 = vmatprep.mubr.bf16.mxu0 %v2426_v40 }
 0x1e1   : > { %983 = vmatprep.mubr.bf16.mxu1 %v2426_v40 }
 0x2aa   : > { %v756_v36 = vpop.f32.mrb[8].mxu0 }
 0x2ab   : > { %v757_v37 = vadd.f32 %v756_v36, %v2664_v34  ;;  %v809_v38 = vpop.f32.mrb[8].mxu1  ;;  %v758_v39 = vpop.f32.mrb[9].mxu0 }
 0x2ac   : > { %v810_v41 = vadd.f32 %v809_v38, %v2664_v34  ;;  %v759_v42 = vadd.f32 %v758_v39, %v2664_v34  ;;  %v811_v43 = vpop.f32.mrb[9].mxu1  ;;  %v760_v44 = vpop.f32.mrb[10].mxu0 }
 0x2ad   : > { %v828_v45 = vmul.f32 0.5, %v757_v37  ;;  %v812_v46 = vadd.f32 %v811_v43, %v2664_v34  ;;  %v761_v47 = vadd.f32 %v760_v44, %v2666_v35  ;;  %v813_v48 = vpop.f32.mrb[10].mxu1  ;;  %v762_v50 = vpop.f32.mrb[11].mxu0 }
 0x2ae   : > { %v830_v51 = vmul.f32 0.5, %v810_v41  ;;  %v829_v52 = vmul.f32 0.5, %v759_v42  ;;  %v814_v53 = vadd.f32 %v813_v48, %v2666_v35  ;;  %v763_v54 = vadd.f32 %v762_v50, %v2666_v35  ;;  %v815_v55 = vpop.f32.mrb[11].mxu1 }
 0x2af   : > { %2253 = vtanh.f32 %v828_v45  ;;  %v831_v56 = vmul.f32 0.5, %v812_v46  ;;  %v832_v57 = vmul.f32 0.5, %v761_v47  ;;  %v816_v58 = vadd.f32 %v815_v55, %v2666_v35 }
 0x2b0   : > { %2255 = vtanh.f32 %v830_v51  ;;  %v834_v59 = vmul.f32 0.5, %v814_v53  ;;  %v833_v61 = vmul.f32 0.5, %v763_v54 }
 0x2b1   : > { %2257 = vtanh.f32 %v829_v52  ;;  %v835_v63 = vmul.f32 0.5, %v816_v58 }
 0x2b2   : > { %2259 = vtanh.f32 %v831_v56  ;;  %v766_v0 = vpop.f32.mrb[12].mxu0 }
 0x2b3   : > { %2261 = vtanh.f32 %v832_v57  ;;  %v767_v5 = vadd.f32 %v766_v0, %v2676_v60  ;;  %v819_v6 = vpop.f32.mrb[12].mxu1  ;;  %v768_v7 = vpop.f32.mrb[13].mxu0 }
 0x2b4   : > { %2263 = vtanh.f32 %v834_v59  ;;  %v820_v8 = vadd.f32 %v819_v6, %v2676_v60  ;;  %v769_v9 = vadd.f32 %v768_v7, %v2676_v60  ;;  %v821_v10 = vpop.f32.mrb[13].mxu1  ;;  %v770_v11 = vpop.f32.mrb[14].mxu0 }
 0x2b5   : > { %2265 = vtanh.f32 %v833_v61  ;;  %v836_v12 = vmul.f32 0.5, %v767_v5  ;;  %v822_v13 = vadd.f32 %v821_v10, %v2676_v60  ;;  %v771_v14 = vadd.f32 %v770_v11, %v2678_v62  ;;  %v823_v19 = vpop.f32.mrb[14].mxu1  ;;  %v772_v20 = vpop.f32.mrb[15].mxu0 }
 0x2b6   : > { %2267 = vtanh.f32 %v835_v63  ;;  %v838_v26 = vmul.f32 0.5, %v820_v8  ;;  %v837_v27 = vmul.f32 0.5, %v769_v9  ;;  %v824_v28 = vadd.f32 %v823_v19, %v2678_v62  ;;  %v825_v29 = vpop.f32.mrb[15].mxu1 }
 0x2b7   : > { %2269 = vtanh.f32 %v836_v12  ;;  %v839_v30 = vmul.f32 0.5, %v822_v13  ;;  %v840_v31 = vmul.f32 0.5, %v771_v14  ;;  %v773_v36 = vadd.f32 %v772_v20, %v2678_v62 }
 0x2b8   : > { %2271 = vtanh.f32 %v838_v26  ;;  %v842_v37 = vmul.f32 0.5, %v824_v28  ;;  %v826_v38 = vadd.f32 %v825_v29, %v2678_v62 }
 0x2b9   : > { %v2254_v39 = vpop.eup %2253  ;;  %2273 = vtanh.f32 %v837_v27  ;;  %v841_v41 = vmul.f32 0.5, %v773_v36 }
 0x2ba   : > { %v2256_v42 = vpop.eup %2255  ;;  %2275 = vtanh.f32 %v839_v30  ;;  %v843_v43 = vmul.f32 0.5, %v826_v38  ;;  %v860_v46 = vmul.f32 0.5, %v2254_v39 }
 0x2bb   : > { %v2258_v44 = vpop.eup %2257  ;;  %2277 = vtanh.f32 %v840_v31  ;;  %v862_v48 = vmul.f32 0.5, %v2256_v42 }
 0x2bc   : > { %v2260_v45 = vpop.eup %2259  ;;  %2279 = vtanh.f32 %v842_v37  ;;  %v861_v51 = vmul.f32 0.5, %v2258_v44  ;;  %v876_v57 = vadd.f32 0.5, %v860_v46 }
 0x2bd   : > { %v2262_v47 = vpop.eup %2261  ;;  %2281 = vtanh.f32 %v841_v41  ;;  %v863_v54 = vmul.f32 0.5, %v2260_v45  ;;  %v878_v63 = vadd.f32 0.5, %v862_v48 }
 0x2be   : > { %v2264_v50 = vpop.eup %2263  ;;  %v864_v52 = vmul.f32 0.5, %v2262_v47  ;;  %2283 = vtanh.f32 %v843_v43  ;;  %v877_v7 = vadd.f32 0.5, %v861_v51 }
 0x2bf   : > { %v2266_v53 = vpop.eup %2265  ;;  %v866_v55 = vmul.f32 0.5, %v2264_v50  ;;  %v879_v11 = vadd.f32 0.5, %v863_v54 }
 0x2c0   : > { %v2268_v56 = vpop.eup %2267  ;;  %v880_v58 = vadd.f32 0.5, %v864_v52  ;;  %v865_v59 = vmul.f32 0.5, %v2266_v53 }
 0x2c1   : > { %v2270_v61 = vpop.eup %2269  ;;  %v882_v0 = vadd.f32 0.5, %v866_v55  ;;  %v867_v5 = vmul.f32 0.5, %v2268_v56  ;;  %v2691_v56 = vld [vmem:[%s3041_s5] sm:$0xff]  }
 0x2c2   : > { %v2272_v6 = vpop.eup %2271  ;;  %v892_v8 = vpack.c.bf16 %v880_v58, %v876_v57  ;;  %v881_v9 = vadd.f32 0.5, %v865_v59  ;;  %v868_v19 = vmul.f32 0.5, %v2270_v61 }
 0x2c3   : > { %v2274_v10 = vpop.eup %2273  ;;  %v894_v12 = vpack.c.bf16 %v882_v0, %v878_v63  ;;  %v883_v13 = vadd.f32 0.5, %v867_v5  ;;  %v870_v27 = vmul.f32 0.5, %v2272_v6 }
 0x2c4   : > { %v2276_v14 = vpop.eup %2275  ;;  %v893_v20 = vpack.c.bf16 %v881_v9, %v877_v7  ;;  %v869_v30 = vmul.f32 0.5, %v2274_v10  ;;  %v884_v41 = vadd.f32 0.5, %v868_v19 }
 0x2c5   : > { %v2278_v26 = vpop.eup %2277  ;;  %v895_v28 = vpack.c.bf16 %v883_v13, %v879_v11  ;;  %v871_v37 = vmul.f32 0.5, %v2276_v14  ;;  %v886_v44 = vadd.f32 0.5, %v870_v27 }
 0x2c6   : > { %v2280_v29 = vpop.eup %2279  ;;  %v872_v31 = vmul.f32 0.5, %v2278_v26  ;;  %908 = vmatprep.subr.bf16.mxu0 %v893_v20  ;;  %v885_v47 = vadd.f32 0.5, %v869_v30 }
 0x2c7   : > { %v2282_v36 = vpop.eup %2281  ;;  %v874_v38 = vmul.f32 0.5, %v2280_v29  ;;  %951 = vmatprep.subr.bf16.mxu1 %v895_v28  ;;  %909 = vmatpush1.bf16.msra.mxu0 %v892_v8  ;;  %v887_v51 = vadd.f32 0.5, %v871_v37 }
 0x2c8   : > { %v2284_v39 = vpop.eup %2283  ;;  %v888_v42 = vadd.f32 0.5, %v872_v31  ;;  %v873_v43 = vmul.f32 0.5, %v2282_v36  ;;  %952 = vmatpush1.bf16.msra.mxu1 %v894_v12 }
 0x2c9   : > { %v890_v45 = vadd.f32 0.5, %v874_v38  ;;  %v875_v46 = vmul.f32 0.5, %v2284_v39 }
 0x2ca   : > { %v896_v48 = vpack.c.bf16 %v888_v42, %v884_v41  ;;  %v889_v50 = vadd.f32 0.5, %v873_v43 }
 0x2cb   : > { %v898_v52 = vpack.c.bf16 %v890_v45, %v886_v44  ;;  %v891_v53 = vadd.f32 0.5, %v875_v46 }
 0x2cc   : > { %v897_v54 = vpack.c.bf16 %v889_v50, %v885_v47 }
 0x2cd   : > { %v899_v55 = vpack.c.bf16 %v891_v53, %v887_v51 }
 0x2ce   : > { %910 = vmatprep.subr.bf16.mxu0 %v897_v54 }
 0x2cf   : > { %953 = vmatprep.subr.bf16.mxu1 %v899_v55  ;;  %911 = vmatpush1.bf16.msra.mxu0 %v896_v48 }
 0x2d0   : > { %954 = vmatpush1.bf16.msra.mxu1 %v898_v52 }
 0x2d2   : > { %2180 = vmatmul.mubr.msk.bf16.vlgmr.msra.gmra.mrb[16].mxu0 %vm715_vm1, %v2691_v56 }
 0x2d3   : > { %2181 = vmatmul.mubr.msk.bf16.vlgmr.msra.gmra.mrb[16].mxu1 %vm715_vm1, %v2691_v56  ;;  %1038 = vmatprep.mubr.bf16.mxu0 %v2426_v40 }
 0x2d4   : > { %1091 = vmatprep.mubr.bf16.mxu1 %v2426_v40 }
 0x3a5   : > { %v942_v57 = vpop.f32.mrb[16].mxu0 }
 0x3a6   : > { %v985_v58 = vpop.f32.mrb[16].mxu1  ;;  %v944_v59 = vpop.f32.mrb[17].mxu0  ;;  %v2712_v11 = vadd.f32 %v942_v57, %v2586_v16 }
 0x3a7   : > { %v987_v61 = vpop.f32.mrb[17].mxu1  ;;  %v946_v63 = vpop.f32.mrb[18].mxu0  ;;  %v2703_v7 = vadd.f32 %v944_v59, %v2546_v1  ;;  %v2721_v13 = vadd.f32 %v985_v58, %v2584_v15 }
 0x3a8   : > { %v2700_v0 = vadd.f32 %v946_v63, %v2590_v18  ;;  %v989_v5 = vpop.f32.mrb[18].mxu1  ;;  %v948_v6 = vpop.f32.mrb[19].mxu0  ;;  %v2715_v12 = vadd.f32 %v987_v61, %v2548_v2 }
 0x3a9   : > { %v2706_v8 = vadd.f32 %v989_v5, %v2588_v17  ;;  %v2709_v9 = vadd.f32 %v948_v6, %v2550_v3  ;;  %v991_v10 = vpop.f32.mrb[19].mxu1 }
 0x3aa   : > { %v2718_v18 = vadd.f32 %v991_v10, %v2552_v4  ;;  %v1002_v3 = vpack.c.bf16 %v2700_v0, %v2712_v11 }
 0x3ab   : > { %v1003_v1 = vpack.c.bf16 %v2709_v9, %v2703_v7  ;;  %v1004_v16 = vpack.c.bf16 %v2706_v8, %v2721_v13 }
 0x3ac   : > { %v1005_v17 = vpack.c.bf16 %v2718_v18, %v2715_v12 }
 0x3ad   : > { %1006 = vmatprep.subr.bf16.mxu0 %v1003_v1 }
 0x3ae   : > { %1059 = vmatprep.subr.bf16.mxu1 %v1005_v17  ;;  %1007 = vmatpush1.bf16.msra.mxu0 %v1002_v3 }
 0x3af   : > { %1060 = vmatpush1.bf16.msra.mxu1 %v1004_v16 }
 0x3b1   : > { %2182 = vmatmul.mubr.msk.bf16.vlgmr.msra.gmra.mrb[20].mxu0 %vm500_vm0, %v2599_v21 }
 0x3b2   : > { %2184 = vmatmul.mubr.msk.bf16.vlgmr.msra.gmra.mrb[20].mxu1 %vm500_vm0, %v2599_v21  ;;  %1048 = vmatprep.mubr.bf16.mxu0 %v2426_v40 }
 0x3b3   : > { %1101 = vmatprep.mubr.bf16.mxu1 %v2426_v40 }
 0x3b9   : > { %2183 = vmatmul.mubr.msk.bf16.gmra.mrb[24].mxu0 %vm500_vm0, %v2610_v22 }
 0x3ba   : > { %2185 = vmatmul.mubr.msk.bf16.gmra.mrb[24].mxu1 %vm500_vm0, %v2610_v22  ;;  %1216 = vmatprep.mubr.bf16.mxu0 %v2426_v40 }
 0x3bb   : > { %1269 = vmatprep.mubr.bf16.mxu1 %v2426_v40 }
 0x484   : > { %v1040_v2 = vpop.f32.mrb[20].mxu0 }
 0x485   : > { %v1041_v4 = vadd.f32 %v1040_v2, %v2620_v24  ;;  %v1093_v15 = vpop.f32.mrb[20].mxu1  ;;  %v1042_v14 = vpop.f32.mrb[21].mxu0 }
 0x486   : > { %v1094_v21 = vadd.f32 %v1093_v15, %v2620_v24  ;;  %v1043_v19 = vadd.f32 %v1042_v14, %v2620_v24  ;;  %v1095_v20 = vpop.f32.mrb[21].mxu1  ;;  %v1044_v26 = vpop.f32.mrb[22].mxu0 }
 0x487   : > { %v1112_v27 = vmul.f32 0.5, %v1041_v4  ;;  %v1096_v28 = vadd.f32 %v1095_v20, %v2620_v24  ;;  %v1045_v22 = vadd.f32 %v1044_v26, %v2618_v23  ;;  %v1097_v29 = vpop.f32.mrb[22].mxu1  ;;  %v1046_v30 = vpop.f32.mrb[23].mxu0 }
 0x488   : > { %v1114_v31 = vmul.f32 0.5, %v1094_v21  ;;  %v1113_v36 = vmul.f32 0.5, %v1043_v19  ;;  %v1098_v37 = vadd.f32 %v1097_v29, %v2618_v23  ;;  %v1047_v38 = vadd.f32 %v1046_v30, %v2618_v23  ;;  %v1099_v39 = vpop.f32.mrb[23].mxu1 }
 0x489   : > { %2285 = vtanh.f32 %v1112_v27  ;;  %v1115_v41 = vmul.f32 0.5, %v1096_v28  ;;  %v1116_v42 = vmul.f32 0.5, %v1045_v22  ;;  %v1100_v43 = vadd.f32 %v1099_v39, %v2618_v23 }
 0x48a   : > { %2287 = vtanh.f32 %v1114_v31  ;;  %v1118_v44 = vmul.f32 0.5, %v1098_v37  ;;  %v1117_v45 = vmul.f32 0.5, %v1047_v38 }
 0x48b   : > { %2289 = vtanh.f32 %v1113_v36  ;;  %v1119_v46 = vmul.f32 0.5, %v1100_v43 }
 0x48c   : > { %2291 = vtanh.f32 %v1115_v41  ;;  %v1050_v47 = vpop.f32.mrb[24].mxu0 }
 0x48d   : > { %2293 = vtanh.f32 %v1116_v42  ;;  %v1051_v48 = vadd.f32 %v1050_v47, %v2622_v25  ;;  %v1103_v50 = vpop.f32.mrb[24].mxu1  ;;  %v1052_v51 = vpop.f32.mrb[25].mxu0 }
 0x48e   : > { %2295 = vtanh.f32 %v1118_v44  ;;  %v1104_v52 = vadd.f32 %v1103_v50, %v2622_v25  ;;  %v1053_v53 = vadd.f32 %v1052_v51, %v2622_v25  ;;  %v1105_v54 = vpop.f32.mrb[25].mxu1  ;;  %v1054_v55 = vpop.f32.mrb[26].mxu0 }
 0x48f   : > { %2297 = vtanh.f32 %v1117_v45  ;;  %v1120_v57 = vmul.f32 0.5, %v1051_v48  ;;  %v1106_v58 = vadd.f32 %v1105_v54, %v2622_v25  ;;  %v1055_v59 = vadd.f32 %v1054_v55, %v2632_v49  ;;  %v1107_v61 = vpop.f32.mrb[26].mxu1  ;;  %v1056_v63 = vpop.f32.mrb[27].mxu0 }
 0x490   : > { %2299 = vtanh.f32 %v1119_v46  ;;  %v1122_v5 = vmul.f32 0.5, %v1104_v52  ;;  %v1121_v6 = vmul.f32 0.5, %v1053_v53  ;;  %v1108_v10 = vadd.f32 %v1107_v61, %v2632_v49  ;;  %v1109_v1 = vpop.f32.mrb[27].mxu1 }
 0x491   : > { %2301 = vtanh.f32 %v1120_v57  ;;  %v1123_v3 = vmul.f32 0.5, %v1106_v58  ;;  %v1124_v17 = vmul.f32 0.5, %v1055_v59  ;;  %v1057_v16 = vadd.f32 %v1056_v63, %v2632_v49 }
 0x492   : > { %2303 = vtanh.f32 %v1122_v5  ;;  %v1126_v2 = vmul.f32 0.5, %v1108_v10  ;;  %v1110_v4 = vadd.f32 %v1109_v1, %v2632_v49 }
 0x493   : > { %v2286_v15 = vpop.eup %2285  ;;  %2305 = vtanh.f32 %v1121_v6  ;;  %v1125_v14 = vmul.f32 0.5, %v1057_v16 }
 0x494   : > { %v2288_v21 = vpop.eup %2287  ;;  %2307 = vtanh.f32 %v1123_v3  ;;  %v1127_v19 = vmul.f32 0.5, %v1110_v4  ;;  %v1144_v27 = vmul.f32 0.5, %v2286_v15 }
 0x495   : > { %v2290_v20 = vpop.eup %2289  ;;  %2309 = vtanh.f32 %v1124_v17  ;;  %v1146_v22 = vmul.f32 0.5, %v2288_v21 }
 0x496   : > { %v2292_v26 = vpop.eup %2291  ;;  %2311 = vtanh.f32 %v1126_v2  ;;  %v1145_v30 = vmul.f32 0.5, %v2290_v20  ;;  %v1160_v41 = vadd.f32 0.5, %v1144_v27 }
 0x497   : > { %v2294_v28 = vpop.eup %2293  ;;  %2313 = vtanh.f32 %v1125_v14  ;;  %v1147_v37 = vmul.f32 0.5, %v2292_v26  ;;  %v1162_v45 = vadd.f32 0.5, %v1146_v22 }
 0x498   : > { %v2296_v29 = vpop.eup %2295  ;;  %v1148_v31 = vmul.f32 0.5, %v2294_v28  ;;  %2315 = vtanh.f32 %v1127_v19  ;;  %v1161_v50 = vadd.f32 0.5, %v1145_v30 }
 0x499   : > { %v2298_v36 = vpop.eup %2297  ;;  %v1150_v38 = vmul.f32 0.5, %v2296_v29  ;;  %v1163_v54 = vadd.f32 0.5, %v1147_v37 }
 0x49a   : > { %v2300_v39 = vpop.eup %2299  ;;  %v1164_v42 = vadd.f32 0.5, %v1148_v31  ;;  %v1149_v43 = vmul.f32 0.5, %v2298_v36 }
 0x49b   : > { %v2302_v44 = vpop.eup %2301  ;;  %v1166_v46 = vadd.f32 0.5, %v1150_v38  ;;  %v1151_v47 = vmul.f32 0.5, %v2300_v39 }
 0x49c   : > { %v2304_v48 = vpop.eup %2303  ;;  %v1176_v51 = vpack.c.bf16 %v1164_v42, %v1160_v41  ;;  %v1165_v52 = vadd.f32 0.5, %v1149_v43  ;;  %v1152_v59 = vmul.f32 0.5, %v2302_v44 }
 0x49d   : > { %v2306_v53 = vpop.eup %2305  ;;  %v1178_v55 = vpack.c.bf16 %v1166_v46, %v1162_v45  ;;  %v1167_v57 = vadd.f32 0.5, %v1151_v47  ;;  %v1154_v5 = vmul.f32 0.5, %v2304_v48 }
 0x49e   : > { %v2308_v58 = vpop.eup %2307  ;;  %v1177_v61 = vpack.c.bf16 %v1165_v52, %v1161_v50  ;;  %v1153_v1 = vmul.f32 0.5, %v2306_v53  ;;  %v1168_v15 = vadd.f32 0.5, %v1152_v59 }
 0x49f   : > { %v2310_v63 = vpop.eup %2309  ;;  %v1179_v6 = vpack.c.bf16 %v1167_v57, %v1163_v54  ;;  %v1155_v16 = vmul.f32 0.5, %v2308_v58  ;;  %v1170_v19 = vadd.f32 0.5, %v1154_v5 }
 0x4a0   : > { %v2312_v10 = vpop.eup %2311  ;;  %v1156_v3 = vmul.f32 0.5, %v2310_v63  ;;  %1184 = vmatprep.subr.bf16.mxu0 %v1177_v61  ;;  %v1169_v27 = vadd.f32 0.5, %v1153_v1 }
 0x4a1   : > { %v2314_v17 = vpop.eup %2313  ;;  %v1158_v2 = vmul.f32 0.5, %v2312_v10  ;;  %1237 = vmatprep.subr.bf16.mxu1 %v1179_v6  ;;  %1185 = vmatpush1.bf16.msra.mxu0 %v1176_v51  ;;  %v1171_v29 = vadd.f32 0.5, %v1155_v16 }
 0x4a2   : > { %v2316_v4 = vpop.eup %2315  ;;  %v1172_v14 = vadd.f32 0.5, %v1156_v3  ;;  %v1157_v21 = vmul.f32 0.5, %v2314_v17  ;;  %1238 = vmatpush1.bf16.msra.mxu1 %v1178_v55 }
 0x4a3   : > { %v1174_v20 = vadd.f32 0.5, %v1158_v2  ;;  %v1159_v26 = vmul.f32 0.5, %v2316_v4 }
 0x4a4   : > { %v1180_v28 = vpack.c.bf16 %v1172_v14, %v1168_v15  ;;  %v1173_v22 = vadd.f32 0.5, %v1157_v21 }
 0x4a5   : > { %v1182_v30 = vpack.c.bf16 %v1174_v20, %v1170_v19  ;;  %v1175_v31 = vadd.f32 0.5, %v1159_v26 }
 0x4a6   : > { %v1181_v36 = vpack.c.bf16 %v1173_v22, %v1169_v27 }
 0x4a7   : > { %v1183_v37 = vpack.c.bf16 %v1175_v31, %v1171_v29 }
 0x4a8   : > { %1186 = vmatprep.subr.bf16.mxu0 %v1181_v36 }
 0x4a9   : > { %1239 = vmatprep.subr.bf16.mxu1 %v1183_v37  ;;  %1187 = vmatpush1.bf16.msra.mxu0 %v1180_v28 }
 0x4aa   : > { %1240 = vmatpush1.bf16.msra.mxu1 %v1182_v30 }
 0x4ac   : > { %2186 = vmatmul.mubr.msk.bf16.vlgmr.msra.gmra.mrb[28].mxu0 %vm715_vm1, %v2645_v32 }
 0x4ad   : > { %2188 = vmatmul.mubr.msk.bf16.vlgmr.msra.gmra.mrb[28].mxu1 %vm715_vm1, %v2645_v32  ;;  %1226 = vmatprep.mubr.bf16.mxu0 %v2426_v40 }
 0x4ae   : > { %1279 = vmatprep.mubr.bf16.mxu1 %v2426_v40 }
 0x4b4   : > { %2187 = vmatmul.mubr.msk.bf16.gmra.mrb[32].mxu0 %vm715_vm1, %v2656_v33 }
 0x4b5   : > { %2189 = vmatmul.mubr.msk.bf16.gmra.mrb[32].mxu1 %vm715_vm1, %v2656_v33  ;;  %1394 = vmatprep.mubr.bf16.mxu0 %v2426_v40 }
 0x4b6   : > { %1437 = vmatprep.mubr.bf16.mxu1 %v2426_v40 }
 0x57f   : > { %v1218_v38 = vpop.f32.mrb[28].mxu0 }
 0x580   : > { %v1219_v39 = vadd.f32 %v1218_v38, %v2664_v34  ;;  %v1271_v41 = vpop.f32.mrb[28].mxu1  ;;  %v1220_v42 = vpop.f32.mrb[29].mxu0 }
 0x581   : > { %v1272_v32 = vadd.f32 %v1271_v41, %v2664_v34  ;;  %v1221_v43 = vadd.f32 %v1220_v42, %v2664_v34  ;;  %v1273_v44 = vpop.f32.mrb[29].mxu1  ;;  %v1222_v45 = vpop.f32.mrb[30].mxu0 }
 0x582   : > { %v1290_v46 = vmul.f32 0.5, %v1219_v39  ;;  %v1274_v47 = vadd.f32 %v1273_v44, %v2664_v34  ;;  %v1223_v33 = vadd.f32 %v1222_v45, %v2666_v35  ;;  %v1275_v48 = vpop.f32.mrb[30].mxu1  ;;  %v1224_v50 = vpop.f32.mrb[31].mxu0 }
 0x583   : > { %v1292_v51 = vmul.f32 0.5, %v1272_v32  ;;  %v1291_v52 = vmul.f32 0.5, %v1221_v43  ;;  %v1276_v53 = vadd.f32 %v1275_v48, %v2666_v35  ;;  %v1225_v54 = vadd.f32 %v1224_v50, %v2666_v35  ;;  %v1277_v55 = vpop.f32.mrb[31].mxu1 }
 0x584   : > { %2317 = vtanh.f32 %v1290_v46  ;;  %v1293_v57 = vmul.f32 0.5, %v1274_v47  ;;  %v1294_v58 = vmul.f32 0.5, %v1223_v33  ;;  %v1278_v59 = vadd.f32 %v1277_v55, %v2666_v35 }
 0x585   : > { %2319 = vtanh.f32 %v1292_v51  ;;  %v1296_v61 = vmul.f32 0.5, %v1276_v53  ;;  %v1295_v63 = vmul.f32 0.5, %v1225_v54 }
 0x586   : > { %2321 = vtanh.f32 %v1291_v52  ;;  %v1297_v5 = vmul.f32 0.5, %v1278_v59 }
 0x587   : > { %2323 = vtanh.f32 %v1293_v57  ;;  %v1228_v6 = vpop.f32.mrb[32].mxu0 }
 0x588   : > { %2325 = vtanh.f32 %v1294_v58  ;;  %v1229_v10 = vadd.f32 %v1228_v6, %v2676_v60  ;;  %v1281_v1 = vpop.f32.mrb[32].mxu1  ;;  %v1230_v3 = vpop.f32.mrb[33].mxu0 }
 0x589   : > { %2327 = vtanh.f32 %v1296_v61  ;;  %v1282_v17 = vadd.f32 %v1281_v1, %v2676_v60  ;;  %v1231_v16 = vadd.f32 %v1230_v3, %v2676_v60  ;;  %v1283_v2 = vpop.f32.mrb[33].mxu1  ;;  %v1232_v4 = vpop.f32.mrb[34].mxu0 }
 0x58a   : > { %2329 = vtanh.f32 %v1295_v63  ;;  %v1298_v15 = vmul.f32 0.5, %v1229_v10  ;;  %v1284_v14 = vadd.f32 %v1283_v2, %v2676_v60  ;;  %v1233_v21 = vadd.f32 %v1232_v4, %v2678_v62  ;;  %v1285_v19 = vpop.f32.mrb[34].mxu1  ;;  %v1234_v20 = vpop.f32.mrb[35].mxu0 }
 0x58b   : > { %2331 = vtanh.f32 %v1297_v5  ;;  %v1300_v26 = vmul.f32 0.5, %v1282_v17  ;;  %v1299_v27 = vmul.f32 0.5, %v1231_v16  ;;  %v1286_v28 = vadd.f32 %v1285_v19, %v2678_v62  ;;  %v1287_v22 = vpop.f32.mrb[35].mxu1 }
 0x58c   : > { %2333 = vtanh.f32 %v1298_v15  ;;  %v1301_v29 = vmul.f32 0.5, %v1284_v14  ;;  %v1302_v30 = vmul.f32 0.5, %v1233_v21  ;;  %v1235_v31 = vadd.f32 %v1234_v20, %v2678_v62 }
 0x58d   : > { %2335 = vtanh.f32 %v1300_v26  ;;  %v1304_v36 = vmul.f32 0.5, %v1286_v28  ;;  %v1288_v37 = vadd.f32 %v1287_v22, %v2678_v62 }
 0x58e   : > { %v2318_v38 = vpop.eup %2317  ;;  %2337 = vtanh.f32 %v1299_v27  ;;  %v1303_v39 = vmul.f32 0.5, %v1235_v31 }
 0x58f   : > { %v2320_v41 = vpop.eup %2319  ;;  %2339 = vtanh.f32 %v1301_v29  ;;  %v1305_v42 = vmul.f32 0.5, %v1288_v37  ;;  %v1322_v44 = vmul.f32 0.5, %v2318_v38 }
 0x590   : > { %v2322_v32 = vpop.eup %2321  ;;  %2341 = vtanh.f32 %v1302_v30  ;;  %v1324_v46 = vmul.f32 0.5, %v2320_v41 }
 0x591   : > { %v2324_v43 = vpop.eup %2323  ;;  %2343 = vtanh.f32 %v1304_v36  ;;  %v1323_v33 = vmul.f32 0.5, %v2322_v32  ;;  %v1338_v54 = vadd.f32 0.5, %v1322_v44 }
 0x592   : > { %v2326_v45 = vpop.eup %2325  ;;  %2345 = vtanh.f32 %v1303_v39  ;;  %v1325_v51 = vmul.f32 0.5, %v2324_v43  ;;  %v1340_v59 = vadd.f32 0.5, %v1324_v46 }
 0x593   : > { %v2328_v47 = vpop.eup %2327  ;;  %v1326_v48 = vmul.f32 0.5, %v2326_v45  ;;  %2347 = vtanh.f32 %v1305_v42  ;;  %v1339_v6 = vadd.f32 0.5, %v1323_v33 }
 0x594   : > { %v2330_v50 = vpop.eup %2329  ;;  %v1328_v52 = vmul.f32 0.5, %v2328_v47  ;;  %v1341_v17 = vadd.f32 0.5, %v1325_v51 }
 0x595   : > { %v2332_v53 = vpop.eup %2331  ;;  %v1342_v55 = vadd.f32 0.5, %v1326_v48  ;;  %v1327_v57 = vmul.f32 0.5, %v2330_v50 }
 0x596   : > { %v2334_v58 = vpop.eup %2333  ;;  %v1344_v61 = vadd.f32 0.5, %v1328_v52  ;;  %v1329_v63 = vmul.f32 0.5, %v2332_v53 }
 0x597   : > { %v2336_v5 = vpop.eup %2335  ;;  %v1354_v10 = vpack.c.bf16 %v1342_v55, %v1338_v54  ;;  %v1343_v1 = vadd.f32 0.5, %v1327_v57  ;;  %v1330_v15 = vmul.f32 0.5, %v2334_v58 }
 0x598   : > { %v2338_v3 = vpop.eup %2337  ;;  %v1356_v16 = vpack.c.bf16 %v1344_v61, %v1340_v59  ;;  %v1345_v2 = vadd.f32 0.5, %v1329_v63  ;;  %v1332_v19 = vmul.f32 0.5, %v2336_v5 }
 0x599   : > { %v2340_v4 = vpop.eup %2339  ;;  %v1355_v14 = vpack.c.bf16 %v1343_v1, %v1339_v6  ;;  %v1331_v27 = vmul.f32 0.5, %v2338_v3  ;;  %v1346_v36 = vadd.f32 0.5, %v1330_v15 }
 0x59a   : > { %v2342_v21 = vpop.eup %2341  ;;  %v1357_v20 = vpack.c.bf16 %v1345_v2, %v1341_v17  ;;  %v1333_v29 = vmul.f32 0.5, %v2340_v4  ;;  %v1348_v39 = vadd.f32 0.5, %v1332_v19 }
 0x59b   : > { %v2344_v26 = vpop.eup %2343  ;;  %v1334_v28 = vmul.f32 0.5, %v2342_v21  ;;  %1362 = vmatprep.subr.bf16.mxu0 %v1355_v14  ;;  %v1347_v32 = vadd.f32 0.5, %v1331_v27 }
 0x59c   : > { %v2346_v22 = vpop.eup %2345  ;;  %v1336_v30 = vmul.f32 0.5, %v2344_v26  ;;  %1405 = vmatprep.subr.bf16.mxu1 %v1357_v20  ;;  %1363 = vmatpush1.bf16.msra.mxu0 %v1354_v10  ;;  %v1349_v45 = vadd.f32 0.5, %v1333_v29 }
 0x59d   : > { %v2348_v31 = vpop.eup %2347  ;;  %v1350_v37 = vadd.f32 0.5, %v1334_v28  ;;  %v1335_v38 = vmul.f32 0.5, %v2346_v22  ;;  %1406 = vmatpush1.bf16.msra.mxu1 %v1356_v16 }
 0x59e   : > { %v1352_v41 = vadd.f32 0.5, %v1336_v30  ;;  %v1337_v42 = vmul.f32 0.5, %v2348_v31 }
 0x59f   : > { %v1358_v43 = vpack.c.bf16 %v1350_v37, %v1346_v36  ;;  %v1351_v44 = vadd.f32 0.5, %v1335_v38 }
 0x5a0   : > { %v1360_v46 = vpack.c.bf16 %v1352_v41, %v1348_v39  ;;  %v1353_v47 = vadd.f32 0.5, %v1337_v42 }
 0x5a1   : > { %v1359_v33 = vpack.c.bf16 %v1351_v44, %v1347_v32 }
 0x5a2   : > { %v1361_v48 = vpack.c.bf16 %v1353_v47, %v1349_v45 }
 0x5a3   : > { %1364 = vmatprep.subr.bf16.mxu0 %v1359_v33 }
 0x5a4   : > { %1407 = vmatprep.subr.bf16.mxu1 %v1361_v48  ;;  %1365 = vmatpush1.bf16.msra.mxu0 %v1358_v43 }
 0x5a5   : > { %1408 = vmatpush1.bf16.msra.mxu1 %v1360_v46 }
 0x5a7   : > { %2190 = vmatmul.mubr.msk.bf16.vlgmr.msra.gmra.mrb[36].mxu0 %vm715_vm1, %v2691_v56 }
 0x5a8   : > { %2191 = vmatmul.mubr.msk.bf16.vlgmr.msra.gmra.mrb[36].mxu1 %vm715_vm1, %v2691_v56  ;;  %1492 = vmatprep.mubr.bf16.mxu0 %v2426_v40 }
 0x5a9   : > { %1545 = vmatprep.mubr.bf16.mxu1 %v2426_v40 }
 0x67a   : > { %v1396_v50 = vpop.f32.mrb[36].mxu0 }
 0x67b   : > { %v1439_v51 = vpop.f32.mrb[36].mxu1  ;;  %v1398_v52 = vpop.f32.mrb[37].mxu0  ;;  %v2806_v5 = vadd.f32 %v1396_v50, %v2712_v11 }
 0x67c   : > { %v1441_v53 = vpop.f32.mrb[37].mxu1  ;;  %v1400_v54 = vpop.f32.mrb[38].mxu0  ;;  %v2797_v59 = vadd.f32 %v1398_v52, %v2703_v7  ;;  %v2815_v10 = vadd.f32 %v1439_v51, %v2721_v13 }
 0x67d   : > { %v2794_v55 = vadd.f32 %v1400_v54, %v2700_v0  ;;  %v1443_v57 = vpop.f32.mrb[38].mxu1  ;;  %v1402_v58 = vpop.f32.mrb[39].mxu0  ;;  %v2809_v6 = vadd.f32 %v1441_v53, %v2715_v12  ;;  %v2413_v12 = vld [vmem:[%s3037_s1] sm:$0xff]  }
 0x67e   : > { %v2800_v61 = vadd.f32 %v1443_v57, %v2706_v8  ;;  %v2803_v56 = vadd.f32 %v1402_v58, %v2709_v9  ;;  %v1445_v63 = vpop.f32.mrb[39].mxu1 }
 0x67f   : > { %v2812_v0 = vadd.f32 %v1445_v63, %v2718_v18  ;;  %v1456_v8 = vpack.c.bf16 %v2794_v55, %v2806_v5  ;;  %v2414_v18 = vld [vmem:[%s3037_s1 + $0x8] sm:$0xff]  }
 0x680   : > { %v1457_v7 = vpack.c.bf16 %v2803_v56, %v2797_v59  ;;  %v1458_v11 = vpack.c.bf16 %v2800_v61, %v2815_v10 }
 0x681   : > { %v1459_v9 = vpack.c.bf16 %v2812_v0, %v2809_v6 }
 0x682   : > { %1460 = vmatprep.subr.bf16.mxu0 %v1457_v7 }
 0x683   : > { %1513 = vmatprep.subr.bf16.mxu1 %v1459_v9  ;;  %1461 = vmatpush1.bf16.msra.mxu0 %v1456_v8 }
 0x684   : > { %1514 = vmatpush1.bf16.msra.mxu1 %v1458_v11 }
 0x686   : > { %2192 = vmatmul.mubr.msk.bf16.vlgmr.msra.gmra.mrb[40].mxu0 %vm500_vm0, %v2413_v12 }
 0x687   : > { %2194 = vmatmul.mubr.msk.bf16.vlgmr.msra.gmra.mrb[40].mxu1 %vm500_vm0, %v2413_v12  ;;  %1502 = vmatprep.mubr.bf16.mxu0 %v2426_v40 }
 0x688   : > { %1555 = vmatprep.mubr.bf16.mxu1 %v2426_v40 }
 0x68e   : > { %2193 = vmatmul.mubr.msk.bf16.gmra.mrb[44].mxu0 %vm500_vm0, %v2414_v18 }
 0x68f   : > { %2195 = vmatmul.mubr.msk.bf16.gmra.mrb[44].mxu1 %vm500_vm0, %v2414_v18  ;;  %1670 = vmatprep.mubr.bf16.mxu0 %v2426_v40 }
 0x690   : > { %1723 = vmatprep.mubr.bf16.mxu1 %v2426_v40 }
 0x759   : > { %v1494_v13 = vpop.f32.mrb[40].mxu0 }
 0x75a   : > { %v1495_v1 = vadd.f32 %v1494_v13, %v2620_v24  ;;  %v1547_v3 = vpop.f32.mrb[40].mxu1  ;;  %v1496_v17 = vpop.f32.mrb[41].mxu0 }
 0x75b   : > { %v1548_v16 = vadd.f32 %v1547_v3, %v2620_v24  ;;  %v1497_v2 = vadd.f32 %v1496_v17, %v2620_v24  ;;  %v1549_v4 = vpop.f32.mrb[41].mxu1  ;;  %v1498_v15 = vpop.f32.mrb[42].mxu0 }
 0x75c   : > { %v1566_v14 = vmul.f32 0.5, %v1495_v1  ;;  %v1550_v21 = vadd.f32 %v1549_v4, %v2620_v24  ;;  %v1499_v19 = vadd.f32 %v1498_v15, %v2618_v23  ;;  %v1551_v20 = vpop.f32.mrb[42].mxu1  ;;  %v1500_v26 = vpop.f32.mrb[43].mxu0 }
 0x75d   : > { %v1568_v27 = vmul.f32 0.5, %v1548_v16  ;;  %v1567_v28 = vmul.f32 0.5, %v1497_v2  ;;  %v1552_v22 = vadd.f32 %v1551_v20, %v2618_v23  ;;  %v1501_v29 = vadd.f32 %v1500_v26, %v2618_v23  ;;  %v1553_v30 = vpop.f32.mrb[43].mxu1 }
 0x75e   : > { %2349 = vtanh.f32 %v1566_v14  ;;  %v1569_v31 = vmul.f32 0.5, %v1550_v21  ;;  %v1570_v36 = vmul.f32 0.5, %v1499_v19  ;;  %v1554_v37 = vadd.f32 %v1553_v30, %v2618_v23 }
 0x75f   : > { %2351 = vtanh.f32 %v1568_v27  ;;  %v1572_v38 = vmul.f32 0.5, %v1552_v22  ;;  %v1571_v24 = vmul.f32 0.5, %v1501_v29 }
 0x760   : > { %2353 = vtanh.f32 %v1567_v28  ;;  %v1573_v39 = vmul.f32 0.5, %v1554_v37 }
 0x761   : > { %2355 = vtanh.f32 %v1569_v31  ;;  %v1504_v41 = vpop.f32.mrb[44].mxu0 }
 0x762   : > { %2357 = vtanh.f32 %v1570_v36  ;;  %v1505_v42 = vadd.f32 %v1504_v41, %v2622_v25  ;;  %v1557_v32 = vpop.f32.mrb[44].mxu1  ;;  %v1506_v43 = vpop.f32.mrb[45].mxu0 }
 0x763   : > { %2359 = vtanh.f32 %v1572_v38  ;;  %v1558_v44 = vadd.f32 %v1557_v32, %v2622_v25  ;;  %v1507_v45 = vadd.f32 %v1506_v43, %v2622_v25  ;;  %v1559_v46 = vpop.f32.mrb[45].mxu1  ;;  %v1508_v47 = vpop.f32.mrb[46].mxu0 }
 0x764   : > { %2361 = vtanh.f32 %v1571_v24  ;;  %v1574_v23 = vmul.f32 0.5, %v1505_v42  ;;  %v1560_v33 = vadd.f32 %v1559_v46, %v2622_v25  ;;  %v1509_v48 = vadd.f32 %v1508_v47, %v2632_v49  ;;  %v1561_v50 = vpop.f32.mrb[46].mxu1  ;;  %v1510_v51 = vpop.f32.mrb[47].mxu0 }
 0x765   : > { %2363 = vtanh.f32 %v1573_v39  ;;  %v1576_v52 = vmul.f32 0.5, %v1558_v44  ;;  %v1575_v53 = vmul.f32 0.5, %v1507_v45  ;;  %v1562_v54 = vadd.f32 %v1561_v50, %v2632_v49  ;;  %v1563_v57 = vpop.f32.mrb[47].mxu1 }
 0x766   : > { %2365 = vtanh.f32 %v1574_v23  ;;  %v1577_v58 = vmul.f32 0.5, %v1560_v33  ;;  %v1578_v63 = vmul.f32 0.5, %v1509_v48  ;;  %v1511_v7 = vadd.f32 %v1510_v51, %v2632_v49 }
 0x767   : > { %2367 = vtanh.f32 %v1576_v52  ;;  %v1580_v8 = vmul.f32 0.5, %v1562_v54  ;;  %v1564_v9 = vadd.f32 %v1563_v57, %v2632_v49 }
 0x768   : > { %v2350_v25 = vpop.eup %2349  ;;  %2369 = vtanh.f32 %v1575_v53  ;;  %v1579_v11 = vmul.f32 0.5, %v1511_v7 }
 0x769   : > { %v2352_v12 = vpop.eup %2351  ;;  %2371 = vtanh.f32 %v1577_v58  ;;  %v1581_v18 = vmul.f32 0.5, %v1564_v9  ;;  %v1598_v3 = vmul.f32 0.5, %v2350_v25 }
 0x76a   : > { %v2354_v13 = vpop.eup %2353  ;;  %2373 = vtanh.f32 %v1578_v63  ;;  %v1600_v16 = vmul.f32 0.5, %v2352_v12 }
 0x76b   : > { %v2356_v1 = vpop.eup %2355  ;;  %2375 = vtanh.f32 %v1580_v8  ;;  %v1599_v4 = vmul.f32 0.5, %v2354_v13  ;;  %v1614_v20 = vadd.f32 0.5, %v1598_v3 }
 0x76c   : > { %v2358_v17 = vpop.eup %2357  ;;  %2377 = vtanh.f32 %v1579_v11  ;;  %v1601_v49 = vmul.f32 0.5, %v2356_v1  ;;  %v1616_v22 = vadd.f32 0.5, %v1600_v16  ;;  %v2416_v16 = vld [vmem:[%s3039_s3 + $0x8] sm:$0xff]  }
 0x76d   : > { %v2360_v2 = vpop.eup %2359  ;;  %v1602_v15 = vmul.f32 0.5, %v2358_v17  ;;  %2379 = vtanh.f32 %v1581_v18  ;;  %v1615_v36 = vadd.f32 0.5, %v1599_v4  ;;  %v2415_v17 = vld [vmem:[%s3039_s3] sm:$0xff]  }
 0x76e   : > { %v2362_v14 = vpop.eup %2361  ;;  %v1604_v21 = vmul.f32 0.5, %v2360_v2  ;;  %v1617_v39 = vadd.f32 0.5, %v1601_v49 }
 0x76f   : > { %v2364_v19 = vpop.eup %2363  ;;  %v1618_v26 = vadd.f32 0.5, %v1602_v15  ;;  %v1603_v27 = vmul.f32 0.5, %v2362_v14 }
 0x770   : > { %v2366_v28 = vpop.eup %2365  ;;  %v1620_v29 = vadd.f32 0.5, %v1604_v21  ;;  %v1605_v30 = vmul.f32 0.5, %v2364_v19 }
 0x771   : > { %v2368_v31 = vpop.eup %2367  ;;  %v1630_v37 = vpack.c.bf16 %v1618_v26, %v1614_v20  ;;  %v1619_v38 = vadd.f32 0.5, %v1603_v27  ;;  %v1606_v43 = vmul.f32 0.5, %v2366_v28 }
 0x772   : > { %v2370_v24 = vpop.eup %2369  ;;  %v1632_v41 = vpack.c.bf16 %v1620_v29, %v1616_v22  ;;  %v1621_v42 = vadd.f32 0.5, %v1605_v30  ;;  %v1608_v46 = vmul.f32 0.5, %v2368_v31 }
 0x773   : > { %v2372_v32 = vpop.eup %2371  ;;  %v1631_v44 = vpack.c.bf16 %v1619_v38, %v1615_v36  ;;  %v1607_v33 = vmul.f32 0.5, %v2370_v24  ;;  %v1622_v54 = vadd.f32 0.5, %v1606_v43 }
 0x774   : > { %v2374_v45 = vpop.eup %2373  ;;  %v1633_v47 = vpack.c.bf16 %v1621_v42, %v1617_v39  ;;  %v1609_v51 = vmul.f32 0.5, %v2372_v32  ;;  %v1624_v63 = vadd.f32 0.5, %v1608_v46 }
 0x775   : > { %v2376_v23 = vpop.eup %2375  ;;  %v1610_v48 = vmul.f32 0.5, %v2374_v45  ;;  %1638 = vmatprep.subr.bf16.mxu0 %v1631_v44  ;;  %v1623_v9 = vadd.f32 0.5, %v1607_v33 }
 0x776   : > { %v2378_v50 = vpop.eup %2377  ;;  %v1612_v52 = vmul.f32 0.5, %v2376_v23  ;;  %1691 = vmatprep.subr.bf16.mxu1 %v1633_v47  ;;  %1639 = vmatpush1.bf16.msra.mxu0 %v1630_v37  ;;  %v1625_v12 = vadd.f32 0.5, %v1609_v51 }
 0x777   : > { %v2380_v53 = vpop.eup %2379  ;;  %v1626_v57 = vadd.f32 0.5, %v1610_v48  ;;  %v1611_v58 = vmul.f32 0.5, %v2378_v50  ;;  %1692 = vmatpush1.bf16.msra.mxu1 %v1632_v41 }
 0x778   : > { %v1628_v7 = vadd.f32 0.5, %v1612_v52  ;;  %v1613_v8 = vmul.f32 0.5, %v2380_v53 }
 0x779   : > { %v1634_v25 = vpack.c.bf16 %v1626_v57, %v1622_v54  ;;  %v1627_v11 = vadd.f32 0.5, %v1611_v58 }
 0x77a   : > { %v1636_v18 = vpack.c.bf16 %v1628_v7, %v1624_v63  ;;  %v1629_v13 = vadd.f32 0.5, %v1613_v8 }
 0x77b   : > { %v1635_v1 = vpack.c.bf16 %v1627_v11, %v1623_v9 }
 0x77c   : > { %v1637_v3 = vpack.c.bf16 %v1629_v13, %v1625_v12 }
 0x77d   : > { %1640 = vmatprep.subr.bf16.mxu0 %v1635_v1 }
 0x77e   : > { %1693 = vmatprep.subr.bf16.mxu1 %v1637_v3  ;;  %1641 = vmatpush1.bf16.msra.mxu0 %v1634_v25 }
 0x77f   : > { %1694 = vmatpush1.bf16.msra.mxu1 %v1636_v18 }
 0x781   : > { %2196 = vmatmul.mubr.msk.bf16.vlgmr.msra.gmra.mrb[48].mxu0 %vm715_vm1, %v2415_v17 }
 0x782   : > { %2198 = vmatmul.mubr.msk.bf16.vlgmr.msra.gmra.mrb[48].mxu1 %vm715_vm1, %v2415_v17  ;;  %1680 = vmatprep.mubr.bf16.mxu0 %v2426_v40 }
 0x783   : > { %1733 = vmatprep.mubr.bf16.mxu1 %v2426_v40 }
 0x789   : > { %2197 = vmatmul.mubr.msk.bf16.gmra.mrb[52].mxu0 %vm715_vm1, %v2416_v16 }
 0x78a   : > { %2199 = vmatmul.mubr.msk.bf16.gmra.mrb[52].mxu1 %vm715_vm1, %v2416_v16  ;;  %1848 = vmatprep.mubr.bf16.mxu0 %v2426_v40 }
 0x78b   : > { %1891 = vmatprep.mubr.bf16.mxu1 %v2426_v40 }
 0x854   : > { %v1672_v2 = vpop.f32.mrb[48].mxu0 }
 0x855   : > { %v1673_v4 = vadd.f32 %v1672_v2, %v2664_v34  ;;  %v1725_v15 = vpop.f32.mrb[48].mxu1  ;;  %v1674_v14 = vpop.f32.mrb[49].mxu0 }
 0x856   : > { %v1726_v49 = vadd.f32 %v1725_v15, %v2664_v34  ;;  %v1675_v21 = vadd.f32 %v1674_v14, %v2664_v34  ;;  %v1727_v19 = vpop.f32.mrb[49].mxu1  ;;  %v1676_v20 = vpop.f32.mrb[50].mxu0 }
 0x857   : > { %v1744_v26 = vmul.f32 0.5, %v1673_v4  ;;  %v1728_v27 = vadd.f32 %v1727_v19, %v2664_v34  ;;  %v1677_v28 = vadd.f32 %v1676_v20, %v2666_v35  ;;  %v1729_v22 = vpop.f32.mrb[50].mxu1  ;;  %v1678_v29 = vpop.f32.mrb[51].mxu0 }
 0x858   : > { %v1746_v30 = vmul.f32 0.5, %v1726_v49  ;;  %v1745_v40 = vmul.f32 0.5, %v1675_v21  ;;  %v1730_v31 = vadd.f32 %v1729_v22, %v2666_v35  ;;  %v1679_v36 = vadd.f32 %v1678_v29, %v2666_v35  ;;  %v1731_v37 = vpop.f32.mrb[51].mxu1 }
 0x859   : > { %2381 = vtanh.f32 %v1744_v26  ;;  %v1747_v38 = vmul.f32 0.5, %v1728_v27  ;;  %v1748_v24 = vmul.f32 0.5, %v1677_v28  ;;  %v1732_v39 = vadd.f32 %v1731_v37, %v2666_v35 }
 0x85a   : > { %2383 = vtanh.f32 %v1746_v30  ;;  %v1750_v41 = vmul.f32 0.5, %v1730_v31  ;;  %v1749_v34 = vmul.f32 0.5, %v1679_v36 }
 0x85b   : > { %2385 = vtanh.f32 %v1745_v40  ;;  %v1751_v42 = vmul.f32 0.5, %v1732_v39 }
 0x85c   : > { %2387 = vtanh.f32 %v1747_v38  ;;  %v1682_v32 = vpop.f32.mrb[52].mxu0 }
 0x85d   : > { %2389 = vtanh.f32 %v1748_v24  ;;  %v1683_v43 = vadd.f32 %v1682_v32, %v2676_v60  ;;  %v1735_v44 = vpop.f32.mrb[52].mxu1  ;;  %v1684_v45 = vpop.f32.mrb[53].mxu0 }
 0x85e   : > { %2391 = vtanh.f32 %v1750_v41  ;;  %v1736_v46 = vadd.f32 %v1735_v44, %v2676_v60  ;;  %v1685_v47 = vadd.f32 %v1684_v45, %v2676_v60  ;;  %v1737_v23 = vpop.f32.mrb[53].mxu1  ;;  %v1686_v33 = vpop.f32.mrb[54].mxu0 }
 0x85f   : > { %2393 = vtanh.f32 %v1749_v34  ;;  %v1752_v35 = vmul.f32 0.5, %v1683_v43  ;;  %v1738_v48 = vadd.f32 %v1737_v23, %v2676_v60  ;;  %v1687_v50 = vadd.f32 %v1686_v33, %v2678_v62  ;;  %v1739_v51 = vpop.f32.mrb[54].mxu1  ;;  %v1688_v52 = vpop.f32.mrb[55].mxu0 }
 0x860   : > { %2395 = vtanh.f32 %v1751_v42  ;;  %v1754_v53 = vmul.f32 0.5, %v1736_v46  ;;  %v1753_v54 = vmul.f32 0.5, %v1685_v47  ;;  %v1740_v57 = vadd.f32 %v1739_v51, %v2678_v62  ;;  %v1741_v58 = vpop.f32.mrb[55].mxu1 }
 0x861   : > { %2397 = vtanh.f32 %v1752_v35  ;;  %v1755_v63 = vmul.f32 0.5, %v1738_v48  ;;  %v1756_v7 = vmul.f32 0.5, %v1687_v50  ;;  %v1689_v8 = vadd.f32 %v1688_v52, %v2678_v62 }
 0x862   : > { %2399 = vtanh.f32 %v1754_v53  ;;  %v1758_v9 = vmul.f32 0.5, %v1740_v57  ;;  %v1742_v25 = vadd.f32 %v1741_v58, %v2678_v62 }
 0x863   : > { %v2382_v60 = vpop.eup %2381  ;;  %2401 = vtanh.f32 %v1753_v54  ;;  %v1757_v11 = vmul.f32 0.5, %v1689_v8 }
 0x864   : > { %v2384_v12 = vpop.eup %2383  ;;  %2403 = vtanh.f32 %v1755_v63  ;;  %v1759_v18 = vmul.f32 0.5, %v1742_v25  ;;  %v1776_v3 = vmul.f32 0.5, %v2382_v60 }
 0x865   : > { %v2386_v13 = vpop.eup %2385  ;;  %2405 = vtanh.f32 %v1756_v7  ;;  %v1778_v16 = vmul.f32 0.5, %v2384_v12  ;;  %v2417_v12 = vld [vmem:[%s3041_s5] sm:$0xff]  }
 0x866   : > { %v2388_v1 = vpop.eup %2387  ;;  %2407 = vtanh.f32 %v1758_v9  ;;  %v1777_v4 = vmul.f32 0.5, %v2386_v13  ;;  %v1792_v19 = vadd.f32 0.5, %v1776_v3 }
 0x867   : > { %v2390_v17 = vpop.eup %2389  ;;  %2409 = vtanh.f32 %v1757_v11  ;;  %v1779_v62 = vmul.f32 0.5, %v2388_v1  ;;  %v1794_v28 = vadd.f32 0.5, %v1778_v16 }
 0x868   : > { %v2392_v2 = vpop.eup %2391  ;;  %v1780_v15 = vmul.f32 0.5, %v2390_v17  ;;  %2411 = vtanh.f32 %v1759_v18  ;;  %v1793_v40 = vadd.f32 0.5, %v1777_v4 }
 0x869   : > { %v2394_v14 = vpop.eup %2393  ;;  %v1782_v49 = vmul.f32 0.5, %v2392_v2  ;;  %v1795_v38 = vadd.f32 0.5, %v1779_v62 }
 0x86a   : > { %v2396_v21 = vpop.eup %2395  ;;  %v1796_v20 = vadd.f32 0.5, %v1780_v15  ;;  %v1781_v26 = vmul.f32 0.5, %v2394_v14 }
 0x86b   : > { %v2398_v27 = vpop.eup %2397  ;;  %v1798_v22 = vadd.f32 0.5, %v1782_v49  ;;  %v1783_v29 = vmul.f32 0.5, %v2396_v21 }
 0x86c   : > { %v2400_v30 = vpop.eup %2399  ;;  %v1808_v31 = vpack.c.bf16 %v1796_v20, %v1792_v19  ;;  %v1797_v36 = vadd.f32 0.5, %v1781_v26  ;;  %v1784_v34 = vmul.f32 0.5, %v2398_v27 }
 0x86d   : > { %v2402_v37 = vpop.eup %2401  ;;  %v1810_v24 = vpack.c.bf16 %v1798_v22, %v1794_v28  ;;  %v1799_v39 = vadd.f32 0.5, %v1783_v29  ;;  %v1786_v43 = vmul.f32 0.5, %v2400_v30 }
 0x86e   : > { %v2404_v41 = vpop.eup %2403  ;;  %v1809_v42 = vpack.c.bf16 %v1797_v36, %v1793_v40  ;;  %v1785_v46 = vmul.f32 0.5, %v2402_v37  ;;  %v1800_v50 = vadd.f32 0.5, %v1784_v34 }
 0x86f   : > { %v2406_v32 = vpop.eup %2405  ;;  %v1811_v44 = vpack.c.bf16 %v1799_v39, %v1795_v38  ;;  %v1787_v33 = vmul.f32 0.5, %v2404_v41  ;;  %v1802_v53 = vadd.f32 0.5, %v1786_v43 }
 0x870   : > { %v2408_v45 = vpop.eup %2407  ;;  %v1788_v47 = vmul.f32 0.5, %v2406_v32  ;;  %1816 = vmatprep.subr.bf16.mxu0 %v1809_v42  ;;  %v1801_v58 = vadd.f32 0.5, %v1785_v46 }
 0x871   : > { %v2410_v23 = vpop.eup %2409  ;;  %v1790_v35 = vmul.f32 0.5, %v2408_v45  ;;  %1859 = vmatprep.subr.bf16.mxu1 %v1811_v44  ;;  %1817 = vmatpush1.bf16.msra.mxu0 %v1808_v31  ;;  %v1803_v8 = vadd.f32 0.5, %v1787_v33 }
 0x872   : > { %v2412_v48 = vpop.eup %2411  ;;  %v1804_v51 = vadd.f32 0.5, %v1788_v47  ;;  %v1789_v52 = vmul.f32 0.5, %v2410_v23  ;;  %1860 = vmatpush1.bf16.msra.mxu1 %v1810_v24 }
 0x873   : > { %v1806_v54 = vadd.f32 0.5, %v1790_v35  ;;  %v1791_v57 = vmul.f32 0.5, %v2412_v48 }
 0x874   : > { %v1812_v63 = vpack.c.bf16 %v1804_v51, %v1800_v50  ;;  %v1805_v7 = vadd.f32 0.5, %v1789_v52 }
 0x875   : > { %v1814_v9 = vpack.c.bf16 %v1806_v54, %v1802_v53  ;;  %v1807_v25 = vadd.f32 0.5, %v1791_v57 }
 0x876   : > { %v1813_v60 = vpack.c.bf16 %v1805_v7, %v1801_v58 }
 0x877   : > { %v1815_v11 = vpack.c.bf16 %v1807_v25, %v1803_v8 }
 0x878   : > { %1818 = vmatprep.subr.bf16.mxu0 %v1813_v60 }
 0x879   : > { %1861 = vmatprep.subr.bf16.mxu1 %v1815_v11  ;;  %1819 = vmatpush1.bf16.msra.mxu0 %v1812_v63 }
 0x87a   : > { %1862 = vmatpush1.bf16.msra.mxu1 %v1814_v9 }
 0x87c   : > { %2200 = vmatmul.mubr.msk.bf16.vlgmr.msra.gmra.mrb[56].mxu0 %vm715_vm1, %v2417_v12 }
 0x87d   : > { %2201 = vmatmul.mubr.msk.bf16.vlgmr.msra.gmra.mrb[56].mxu1 %vm715_vm1, %v2417_v12 }
 0x94f   : > { %v1850_v18 = vpop.f32.mrb[56].mxu0 }
 0x950   : > { %v1902_v13 = vadd.f32 %v1850_v18, %v2806_v5  ;;  %v1893_v1 = vpop.f32.mrb[56].mxu1  ;;  %v1852_v3 = vpop.f32.mrb[57].mxu0 }
 0x951   : > { %v1903_v17 = vadd.f32 %v1852_v3, %v2797_v59  ;;  %v1895_v16 = vpop.f32.mrb[57].mxu1  ;;  %v1854_v2 = vpop.f32.mrb[58].mxu0  ;;  %v1904_v21 = vadd.f32 %v1893_v1, %v2815_v10 }
 0x952   : > { %v1897_v4 = vpop.f32.mrb[58].mxu1  ;;  %1910 = vxpose.xlu1.b32.start [1/2] (short) %v1902_v13, 128  ;;  %v1856_v15 = vpop.f32.mrb[59].mxu0  ;;  %v1906_v62 = vadd.f32 %v1854_v2, %v2794_v55  ;;  %v1905_v5 = vadd.f32 %v1895_v16, %v2809_v6 }
 0x953   : > { %v1899_v14 = vpop.f32.mrb[59].mxu1  ;;  %1942 = vxpose.xlu0.b32.start [1/2] (short) %v1903_v17, 128  ;;  %v1907_v49 = vadd.f32 %v1856_v15, %v2803_v56  ;;  %v1908_v19 = vadd.f32 %v1897_v4, %v2800_v61 }
 0x954   : > { %v1909_v59 = vadd.f32 %v1899_v14, %v2812_v0 }
 0x956   : > { %1911 = vxpose.xlu1.b32.end [2/2] (short) %v1906_v62, 128 }
 0x957   : > { %1943 = vxpose.xlu0.b32.end [2/2] (short) %v1907_v49, 128 }
 0x98f   : > { %2006 = vxpose.xlu1.b32.start [1/2] (short) %v1905_v5, 128 }
 0x990   : > { %1974 = vxpose.xlu0.b32.start [1/2] (short) %v1904_v21, 128 }
 0x993   : > { %2007 = vxpose.xlu1.b32.end [2/2] (short) %v1909_v59, 128 }
 0x994   : > { %1975 = vxpose.xlu0.b32.end [2/2] (short) %v1908_v19, 128 }
 0x9d2   : > { %v1926_v55 = vpop.trf.xlu1 }
 0x9d3   : > { %2038 = vst.msk [vmem:[%s2903_s22] sm:$0xff] %vm500_vm0, %v1926_v55  ;;  %v1958_v61 = vpop.trf.xlu0 }
 0x9d4   : > { %2054 = vst.msk [vmem:[%s2903_s22 + $0x80] sm:$0xff] %vm500_vm0, %v1958_v61 }
 0x9d6   : > { %v1927_v56 = vpop.trf.xlu1 }
 0x9d7   : > { %2039 = vst.msk [vmem:[%s2903_s22 + $0x8] sm:$0xff] %vm500_vm0, %v1927_v56  ;;  %v1959_v6 = vpop.trf.xlu0 }
 0x9d8   : > { %2055 = vst.msk [vmem:[%s2903_s22 + $0x88] sm:$0xff] %vm500_vm0, %v1959_v6 }
 0x9da   : > { %v1928_v0 = vpop.trf.xlu1 }
 0x9db   : > { %2040 = vst.msk [vmem:[%s2903_s22 + $0x10] sm:$0xff] %vm500_vm0, %v1928_v0  ;;  %v1960_v10 = vpop.trf.xlu0 }
 0x9dc   : > { %2056 = vst.msk [vmem:[%s2903_s22 + $0x90] sm:$0xff] %vm500_vm0, %v1960_v10 }
 0x9de   : > { %v1929_v20 = vpop.trf.xlu1 }
 0x9df   : > { %2041 = vst.msk [vmem:[%s2903_s22 + $0x18] sm:$0xff] %vm500_vm0, %v1929_v20  ;;  %v1961_v26 = vpop.trf.xlu0 }
 0x9e0   : > { %2057 = vst.msk [vmem:[%s2903_s22 + $0x98] sm:$0xff] %vm500_vm0, %v1961_v26 }
 0x9e2   : > { %v1930_v27 = vpop.trf.xlu1 }
 0x9e3   : > { %2042 = vst.msk [vmem:[%s2903_s22 + $0x20] sm:$0xff] %vm500_vm0, %v1930_v27  ;;  %v1962_v28 = vpop.trf.xlu0 }
 0x9e4   : > { %2058 = vst.msk [vmem:[%s2903_s22 + $0xa0] sm:$0xff] %vm500_vm0, %v1962_v28 }
 0x9e6   : > { %v1931_v22 = vpop.trf.xlu1 }
 0x9e7   : > { %2043 = vst.msk [vmem:[%s2903_s22 + $0x28] sm:$0xff] %vm500_vm0, %v1931_v22  ;;  %v1963_v29 = vpop.trf.xlu0 }
 0x9e8   : > { %2059 = vst.msk [vmem:[%s2903_s22 + $0xa8] sm:$0xff] %vm500_vm0, %v1963_v29 }
 0x9ea   : > { %v1932_v30 = vpop.trf.xlu1 }
 0x9eb   : > { %2044 = vst.msk [vmem:[%s2903_s22 + $0x30] sm:$0xff] %vm500_vm0, %v1932_v30  ;;  %v1964_v40 = vpop.trf.xlu0 }
 0x9ec   : > { %2060 = vst.msk [vmem:[%s2903_s22 + $0xb0] sm:$0xff] %vm500_vm0, %v1964_v40 }
 0x9ee   : > { %v1933_v31 = vpop.trf.xlu1 }
 0x9ef   : > { %2045 = vst.msk [vmem:[%s2903_s22 + $0x38] sm:$0xff] %vm500_vm0, %v1933_v31  ;;  %v1965_v36 = vpop.trf.xlu0 }
 0x9f0   : > { %2061 = vst.msk [vmem:[%s2903_s22 + $0xb8] sm:$0xff] %vm500_vm0, %v1965_v36 }
 0x9f2   : > { %v1934_v37 = vpop.trf.xlu1 }
 0x9f3   : > { %2046 = vst.msk [vmem:[%s2903_s22 + $0x40] sm:$0xff] %vm500_vm0, %v1934_v37  ;;  %v1966_v38 = vpop.trf.xlu0 }
 0x9f4   : > { %2062 = vst.msk [vmem:[%s2903_s22 + $0xc0] sm:$0xff] %vm500_vm0, %v1966_v38 }
 0x9f6   : > { %v1935_v24 = vpop.trf.xlu1 }
 0x9f7   : > { %2047 = vst.msk [vmem:[%s2903_s22 + $0x48] sm:$0xff] %vm500_vm0, %v1935_v24  ;;  %v1967_v39 = vpop.trf.xlu0 }
 0x9f8   : > { %2063 = vst.msk [vmem:[%s2903_s22 + $0xc8] sm:$0xff] %vm500_vm0, %v1967_v39 }
 0x9fa   : > { %v1936_v41 = vpop.trf.xlu1 }
 0x9fb   : > { %2048 = vst.msk [vmem:[%s2903_s22 + $0x50] sm:$0xff] %vm500_vm0, %v1936_v41  ;;  %v1968_v34 = vpop.trf.xlu0 }
 0x9fc   : > { %2064 = vst.msk [vmem:[%s2903_s22 + $0xd0] sm:$0xff] %vm500_vm0, %v1968_v34 }
 0x9fe   : > { %v1937_v42 = vpop.trf.xlu1 }
 0x9ff   : > { %2049 = vst.msk [vmem:[%s2903_s22 + $0x58] sm:$0xff] %vm500_vm0, %v1937_v42  ;;  %v1969_v32 = vpop.trf.xlu0 }
 0xa00   : > { %2065 = vst.msk [vmem:[%s2903_s22 + $0xd8] sm:$0xff] %vm500_vm0, %v1969_v32 }
 0xa02   : > { %v1938_v43 = vpop.trf.xlu1 }
 0xa03   : > { %2050 = vst.msk [vmem:[%s2903_s22 + $0x60] sm:$0xff] %vm500_vm0, %v1938_v43  ;;  %v1970_v44 = vpop.trf.xlu0 }
 0xa04   : > { %2066 = vst.msk [vmem:[%s2903_s22 + $0xe0] sm:$0xff] %vm500_vm0, %v1970_v44 }
 0xa06   : > { %v1939_v45 = vpop.trf.xlu1 }
 0xa07   : > { %2051 = vst.msk [vmem:[%s2903_s22 + $0x68] sm:$0xff] %vm500_vm0, %v1939_v45  ;;  %v1971_v46 = vpop.trf.xlu0 }
 0xa08   : > { %2067 = vst.msk [vmem:[%s2903_s22 + $0xe8] sm:$0xff] %vm500_vm0, %v1971_v46 }
 0xa0a   : > { %v1940_v47 = vpop.trf.xlu1 }
 0xa0b   : > { %2052 = vst.msk [vmem:[%s2903_s22 + $0x70] sm:$0xff] %vm500_vm0, %v1940_v47  ;;  %v1972_v23 = vpop.trf.xlu0 }
 0xa0c   : > { %2068 = vst.msk [vmem:[%s2903_s22 + $0xf0] sm:$0xff] %vm500_vm0, %v1972_v23 }
 0xa0e   : > { %v1941_v33 = vpop.trf.xlu1 }
 0xa0f   : > { %2053 = vst.msk [vmem:[%s2903_s22 + $0x78] sm:$0xff] %vm500_vm0, %v1941_v33  ;;  %v1973_v35 = vpop.trf.xlu0 }
 0xa10   : > { %2069 = vst.msk [vmem:[%s2903_s22 + $0xf8] sm:$0xff] %vm500_vm0, %v1973_v35 }
 0xa12   : > { %v2022_v48 = vpop.trf.xlu1 }
 0xa13   : > { %2086 = vst.msk [vmem:[%s2903_s22 + $0x180] sm:$0xff] %vm500_vm0, %v2022_v48  ;;  %v1990_v50 = vpop.trf.xlu0 }
 0xa14   : > { %2070 = vst.msk [vmem:[%s2903_s22 + $0x100] sm:$0xff] %vm500_vm0, %v1990_v50 }
 0xa16   : > { %v2023_v51 = vpop.trf.xlu1 }
 0xa17   : > { %2087 = vst.msk [vmem:[%s2903_s22 + $0x188] sm:$0xff] %vm500_vm0, %v2023_v51  ;;  %v1991_v52 = vpop.trf.xlu0 }
 0xa18   : > { %2071 = vst.msk [vmem:[%s2903_s22 + $0x108] sm:$0xff] %vm500_vm0, %v1991_v52 }
 0xa1a   : > { %v2024_v53 = vpop.trf.xlu1 }
 0xa1b   : > { %2088 = vst.msk [vmem:[%s2903_s22 + $0x190] sm:$0xff] %vm500_vm0, %v2024_v53  ;;  %v1992_v54 = vpop.trf.xlu0 }
 0xa1c   : > { %2072 = vst.msk [vmem:[%s2903_s22 + $0x110] sm:$0xff] %vm500_vm0, %v1992_v54 }
 0xa1e   : > { %v2025_v57 = vpop.trf.xlu1 }
 0xa1f   : > { %2089 = vst.msk [vmem:[%s2903_s22 + $0x198] sm:$0xff] %vm500_vm0, %v2025_v57  ;;  %v1993_v58 = vpop.trf.xlu0 }
 0xa20   : > { %2073 = vst.msk [vmem:[%s2903_s22 + $0x118] sm:$0xff] %vm500_vm0, %v1993_v58 }
 0xa22   : > { %v2026_v63 = vpop.trf.xlu1 }
 0xa23   : > { %2090 = vst.msk [vmem:[%s2903_s22 + $0x1a0] sm:$0xff] %vm500_vm0, %v2026_v63  ;;  %v1994_v7 = vpop.trf.xlu0 }
 0xa24   : > { %2074 = vst.msk [vmem:[%s2903_s22 + $0x120] sm:$0xff] %vm500_vm0, %v1994_v7 }
 0xa26   : > { %v2027_v8 = vpop.trf.xlu1 }
 0xa27   : > { %2091 = vst.msk [vmem:[%s2903_s22 + $0x1a8] sm:$0xff] %vm500_vm0, %v2027_v8  ;;  %v1995_v9 = vpop.trf.xlu0 }
 0xa28   : > { %2075 = vst.msk [vmem:[%s2903_s22 + $0x128] sm:$0xff] %vm500_vm0, %v1995_v9 }
 0xa2a   : > { %v2028_v25 = vpop.trf.xlu1 }
 0xa2b   : > { %2092 = vst.msk [vmem:[%s2903_s22 + $0x1b0] sm:$0xff] %vm500_vm0, %v2028_v25  ;;  %v1996_v60 = vpop.trf.xlu0 }
 0xa2c   : > { %2076 = vst.msk [vmem:[%s2903_s22 + $0x130] sm:$0xff] %vm500_vm0, %v1996_v60 }
 0xa2e   : > { %v2029_v11 = vpop.trf.xlu1 }
 0xa2f   : > { %2093 = vst.msk [vmem:[%s2903_s22 + $0x1b8] sm:$0xff] %vm500_vm0, %v2029_v11  ;;  %v1997_v12 = vpop.trf.xlu0 }
 0xa30   : > { %2077 = vst.msk [vmem:[%s2903_s22 + $0x138] sm:$0xff] %vm500_vm0, %v1997_v12 }
 0xa32   : > { %v2030_v18 = vpop.trf.xlu1 }
 0xa33   : > { %2094 = vst.msk [vmem:[%s2903_s22 + $0x1c0] sm:$0xff] %vm500_vm0, %v2030_v18  ;;  %v1998_v13 = vpop.trf.xlu0 }
 0xa34   : > { %2078 = vst.msk [vmem:[%s2903_s22 + $0x140] sm:$0xff] %vm500_vm0, %v1998_v13 }
 0xa36   : > { %v2031_v1 = vpop.trf.xlu1 }
 0xa37   : > { %2095 = vst.msk [vmem:[%s2903_s22 + $0x1c8] sm:$0xff] %vm500_vm0, %v2031_v1  ;;  %v1999_v3 = vpop.trf.xlu0 }
 0xa38   : > { %2079 = vst.msk [vmem:[%s2903_s22 + $0x148] sm:$0xff] %vm500_vm0, %v1999_v3 }
 0xa3a   : > { %v2032_v17 = vpop.trf.xlu1 }
 0xa3b   : > { %2096 = vst.msk [vmem:[%s2903_s22 + $0x1d0] sm:$0xff] %vm500_vm0, %v2032_v17  ;;  %v2000_v16 = vpop.trf.xlu0 }
 0xa3c   : > { %2080 = vst.msk [vmem:[%s2903_s22 + $0x150] sm:$0xff] %vm500_vm0, %v2000_v16 }
 0xa3e   : > { %v2033_v2 = vpop.trf.xlu1 }
 0xa3f   : > { %2097 = vst.msk [vmem:[%s2903_s22 + $0x1d8] sm:$0xff] %vm500_vm0, %v2033_v2  ;;  %v2001_v4 = vpop.trf.xlu0 }
 0xa40   : > { %2081 = vst.msk [vmem:[%s2903_s22 + $0x158] sm:$0xff] %vm500_vm0, %v2001_v4 }
 0xa42   : > { %v2034_v15 = vpop.trf.xlu1 }
 0xa43   : > { %2098 = vst.msk [vmem:[%s2903_s22 + $0x1e0] sm:$0xff] %vm500_vm0, %v2034_v15  ;;  %v2002_v14 = vpop.trf.xlu0 }
 0xa44   : > { %2082 = vst.msk [vmem:[%s2903_s22 + $0x160] sm:$0xff] %vm500_vm0, %v2002_v14 }
 0xa46   : > { %v2035_v62 = vpop.trf.xlu1 }
 0xa47   : > { %2099 = vst.msk [vmem:[%s2903_s22 + $0x1e8] sm:$0xff] %vm500_vm0, %v2035_v62  ;;  %v2003_v49 = vpop.trf.xlu0 }
 0xa48   : > { %2083 = vst.msk [vmem:[%s2903_s22 + $0x168] sm:$0xff] %vm500_vm0, %v2003_v49 }
 0xa4a   : > { %v2036_v5 = vpop.trf.xlu1 }
 0xa4b   : > { %2100 = vst.msk [vmem:[%s2903_s22 + $0x1f0] sm:$0xff] %vm500_vm0, %v2036_v5  ;;  %v2004_v21 = vpop.trf.xlu0 }
 0xa4c   : > { %2084 = vst.msk [vmem:[%s2903_s22 + $0x170] sm:$0xff] %vm500_vm0, %v2004_v21 }
 0xa4e   : > { %v2037_v59 = vpop.trf.xlu1 }
 0xa4f   : > { %2101 = vst.msk [vmem:[%s2903_s22 + $0x1f8] sm:$0xff] %vm500_vm0, %v2037_v59  ;;  %v2005_v19 = vpop.trf.xlu0 }
 0xa50   : > { %2085 = vst.msk [vmem:[%s2903_s22 + $0x178] sm:$0xff] %vm500_vm0, %v2005_v19 }
 0xa51 PF: > { %s16_s21 = sadd.s32 1, %s2424_s21  }
 0xa52   : > { %p13_p4 = scmp.ge.s32.totalorder %s16_s21, 4  }
 0xa54   :  { %15 = sbr.rel (!%p13_p4) target bundleno = 1 (0x1), region = 74 }

</bundles_post_ra>
